<compile_context>
chip_gen: v7x
topology: tpu7x:2x2x1
jax: 0.10.0
libtpu: 0.0.40
codegen_flags: <defaults>
</compile_context>

<pallas_src>
import functools

import jax
import jax.numpy as jnp
from jax import lax
from jax.experimental import pallas as pl
from jax.experimental.pallas import tpu as pltpu


def _round_up(a, m):
    return (a + m - 1) // m * m


def _device_kind():
    try:
        return jax.devices()[0].device_kind.lower()
    except Exception:
        return ""


def _default_tanh_dtype():
    kind = _device_kind()
    # bf16 EUP fast path exists on v6e / v7x; v5e and unknown chips keep f32.
    if ("v6" in kind) or ("v7" in kind):
        return jnp.bfloat16
    return jnp.float32


def _physical_vmem_bytes():
    try:
        return int(pltpu.get_tpu_info().vmem_capacity_bytes)
    except Exception:
        return 128 * 1024 * 1024


def _seq_self_attn_kernel(qb_ref, kt_ref, xkv_ref, wa_ref, ba_ref, v_ref, a_ref,
                          *scratch, t_actual, tq, kc_size, n_kc, attention_width,
                          window_skip, eps, tanh_dtype, matmul_dtype):
    """One (batch, query-tile) grid step.

    qb_ref : (TQ, U)        precomputed x@Wt + bh for this query tile
    kt_ref : (n_kc, U, KC)  precomputed (x@Wx)^T, key-time chunked onto lanes
    xkv_ref: (T_pad, C)     time-major values for v = a @ x
    wa_ref : (U,)  SMEM     energy weights
    ba_ref : (1,)  SMEM     energy bias
    v_ref  : (TQ, C)
    a_ref  : (TQ, T_pad)
    scratch: optional (n_kc, TQ, KC) f32 energy staging buffer (only when n_kc > 1)
    """
    t_pad = a_ref.shape[-1]
    n_units = qb_ref.shape[-1]
    qi = pl.program_id(1)
    q_start = qi * tq

    qb = qb_ref[...].astype(jnp.float32)                         # (TQ, U), bh folded in
    ba0 = ba_ref[0]

    def energy_chunk(c):
        # e_c[i, j] = ba + sum_u Wa[u] * tanh(qb[i, u] + kT[u, c*KC + j])
        kt = kt_ref[c].astype(jnp.float32)                        # (U, KC)
        e_c = jnp.full((tq, kc_size), ba0, dtype=jnp.float32)
        for u in range(n_units):                                  # static unroll; U is small
            s = qb[:, u:u + 1] + kt[u:u + 1, :]                   # (TQ, KC)
            t = jnp.tanh(s.astype(tanh_dtype)).astype(jnp.float32)
            e_c = e_c + wa_ref[u] * t
        return e_c

    if n_kc == 1:
        e = energy_chunk(0)                                       # (TQ, T_pad)
    else:
        e_scr = scratch[0]
        if window_skip and attention_width is not None:
            w = attention_width
            lo = q_start - (w - w // 2 - 1)       # smallest surviving key column
            hi = q_start + tq - 1 + w // 2        # largest surviving key column (incl.)

            @pl.loop(0, n_kc)
            def _(c):
                k0 = c * kc_size
                active = jnp.logical_and(k0 + kc_size - 1 >= lo, k0 <= hi)

                @pl.when(active)
                def _():
                    e_scr[c] = energy_chunk(c)

                @pl.when(jnp.logical_not(active))
                def _():
                    e_scr[c] = jnp.full((tq, kc_size), -jnp.inf, dtype=jnp.float32)
        else:
            @pl.loop(0, n_kc)
            def _(c):
                e_scr[c] = energy_chunk(c)

        # Re-assemble the full row with static chunk reads; key-time stays on lanes.
        e = jnp.concatenate([e_scr[c] for c in range(n_kc)], axis=-1)  # (TQ, T_pad)

    # ---- softmax over the real key columns (reference semantics) -----------------
    col = lax.broadcasted_iota(jnp.int32, (tq, t_pad), 1)
    if t_actual < t_pad:
        e = jnp.where(col < t_actual, e, -jnp.inf)                # drop padded keys
    e = e - jnp.max(e, axis=-1, keepdims=True)
    e = jnp.exp(e)
    if attention_width is not None:
        # NOTE: the PyTorch reference masks *after* max/exp, so masked logits still
        # influence the row max.  Keep that ordering (window_skip perturbs it only
        # through the +eps term).
        row = q_start + lax.broadcasted_iota(jnp.int32, (tq, t_pad), 0)
        lower = col - attention_width // 2
        upper = lower + attention_width
        wmask = jnp.logical_and(lower <= row, row < upper)
        e = jnp.where(wmask, e, 0.0)
    denom = jnp.sum(e, axis=-1, keepdims=True) + eps
    a = e * pl.reciprocal(denom, approx=False)                    # (TQ, T_pad)

    a_ref[...] = a.astype(a_ref.dtype)

    # ---- v = a @ x ----------------------------------------------------------------
    xkv = xkv_ref[...]
    v = jnp.dot(a.astype(matmul_dtype), xkv.astype(matmul_dtype),
                preferred_element_type=jnp.float32)               # (TQ, C)
    v_ref[...] = v.astype(v_ref.dtype)


def seq_self_attention(x, Wx, Wt, bh, Wa, ba, *, attention_width=None, eps=1e-5,
                       q_tile=128, tanh_dtype=None, matmul_dtype=jnp.float32,
                       a_dtype=None, window_skip=False):
    """Additive self-attention.  x: (B, C, T).  Returns (v: (B, C, T), a: (B, T, T)).

    tanh_dtype    : None -> bf16 on v6e/v7x, f32 elsewhere.  f32 keeps 1e-5 exactness.
    matmul_dtype  : dtype for the final a @ x matmul inputs (f32 = exact, bf16 = fast).
    a_dtype       : dtype of the returned attention map (None -> x.dtype).
    window_skip   : skip tanh work on key chunks fully outside the attention window
                    (changes only the eps-level max semantics; off by default).
    """
    B, C, T = x.shape
    U = Wt.shape[1]
    if tanh_dtype is None:
        tanh_dtype = _default_tanh_dtype()
    out_dtype = x.dtype
    a_out_dtype = out_dtype if a_dtype is None else a_dtype
    a_itemsize = jnp.dtype(a_out_dtype).itemsize

    phys_vmem = _physical_vmem_bytes()
    two_tc = "v7" in _device_kind()            # v7x: 2 TensorCores per chip

    # ---- tile planning (generation aware; shrink TQ until the footprint fits) -------
    def plan(tq_cap):
        TQ = min(int(tq_cap), _round_up(T, 8))
        TQ = max(8, _round_up(TQ, 8))
        T_pad = _round_up(T, TQ)
        nq = T_pad // TQ
        # Expose >= 2 grid steps so both v7x TensorCores get work at B=1, short T.
        if two_tc and B * nq < 2 and TQ % 16 == 0:
            TQ //= 2
            nq = T_pad // TQ
        if T_pad > 256 and T_pad % 128 == 0:
            KC = 128
        elif T_pad > 256 and T_pad % 64 == 0:
            KC = 64
        else:
            KC = T_pad
        n_kc = T_pad // KC
        lane = 128
        est = (2 * TQ * max(U, lane) * 4            # qb block (double buffered, lane-padded)
               + 2 * U * T_pad * 4                  # kT slab
               + 2 * T_pad * max(C, lane) * 4       # x slab
               + 2 * TQ * T_pad * a_itemsize        # a output block
               + 2 * TQ * max(C, lane) * 4          # v output block
               + (TQ * T_pad * 4 if n_kc > 1 else 0)  # energy scratch
               + 3 * TQ * T_pad * 4)                # softmax working set
        return TQ, T_pad, nq, KC, n_kc, est

    budget = max(phys_vmem * 3 // 4, 32 * 1024 * 1024)
    tq_cap = q_tile
    while True:
        TQ, T_pad, nq, KC, n_kc, est = plan(tq_cap)
        if est <= budget * 9 // 10 or TQ <= 8:
            break
        tq_cap = max(8, TQ // 2)
    vmem_limit = int(min(phys_vmem - (8 << 20),
                         max(phys_vmem * 3 // 4, est + (4 << 20))))
    vmem_limit = max(vmem_limit, 16 << 20)

    # ---- host-side (XLA) prep: pad, fold bias, hoist both projections ---------------
    pad = T_pad - T
    xp = jnp.pad(x, ((0, 0), (0, 0), (0, pad))) if pad else x            # (B, C, T_pad)
    x_t = jnp.transpose(xp, (0, 2, 1)).astype(jnp.float32)               # (B, T_pad, C)
    qb = jnp.matmul(x_t, Wt.astype(jnp.float32)) + bh.reshape(1, 1, U).astype(jnp.float32)
    k = jnp.matmul(x_t, Wx.astype(jnp.float32))                          # (B, T_pad, U)
    kt = k.reshape(B, n_kc, KC, U).transpose(0, 1, 3, 2)                 # (B, n_kc, U, KC)
    wa1 = Wa.reshape(U).astype(jnp.float32)
    ba1 = ba.reshape(1).astype(jnp.float32)

    kernel = functools.partial(
        _seq_self_attn_kernel, t_actual=T, tq=TQ, kc_size=KC, n_kc=n_kc,
        attention_width=attention_width, window_skip=window_skip, eps=eps,
        tanh_dtype=tanh_dtype, matmul_dtype=matmul_dtype)

    scratch_shapes = []
    if n_kc > 1:
        scratch_shapes.append(pltpu.VMEM((n_kc, TQ, KC), jnp.float32))

    v_t, a = pl.pallas_call(
        kernel,
        grid=(B, nq),
        in_specs=[
            pl.BlockSpec((None, TQ, U), lambda b, qi: (b, qi, 0)),          # qb (per tile)
            pl.BlockSpec((None, n_kc, U, KC), lambda b, qi: (b, 0, 0, 0)),  # kT (per batch)
            pl.BlockSpec((None, T_pad, C), lambda b, qi: (b, 0, 0)),        # x  (per batch)
            pl.BlockSpec(memory_space=pltpu.MemorySpace.SMEM),              # Wa (scalars)
            pl.BlockSpec(memory_space=pltpu.MemorySpace.SMEM),              # ba (scalar)
        ],
        out_specs=[
            pl.BlockSpec((None, TQ, C), lambda b, qi: (b, qi, 0)),          # v block
            pl.BlockSpec((None, TQ, T_pad), lambda b, qi: (b, qi, 0)),      # a block
        ],
        out_shape=[
            jax.ShapeDtypeStruct((B, T_pad, C), out_dtype),
            jax.ShapeDtypeStruct((B, T_pad, T_pad), a_out_dtype),
        ],
        scratch_shapes=scratch_shapes,
        compiler_params=pltpu.CompilerParams(
            dimension_semantics=("parallel", "parallel"),
            vmem_limit_bytes=vmem_limit,
        ),
    )(qb, kt, x_t, wa1, ba1)

    v = jnp.transpose(v_t[:, :T, :], (0, 2, 1))                            # (B, C, T)
    a = a[:, :T, :T]                                                       # (B, T, T)
    return v, a


def _reference(x, Wx, Wt, bh, Wa, ba, *, attention_width=None, eps=1e-5):
    """Plain-JAX mirror of the PyTorch forward, for verification."""
    xt = jnp.transpose(x, (0, 2, 1))                               # (B, T, C)
    q = jnp.matmul(xt, Wt)[:, :, None, :]                          # (B, T, 1, U)
    k = jnp.matmul(xt, Wx)[:, None, :, :]                          # (B, 1, T, U)
    h = jnp.tanh(q + k + bh)                                       # (B, T, T, U)
    e = jnp.squeeze(jnp.matmul(h, Wa) + ba, -1)                    # (B, T, T)
    e = e - jnp.max(e, axis=-1, keepdims=True)
    e = jnp.exp(e)
    if attention_width is not None:
        T = e.shape[1]
        lower = jnp.arange(T) - attention_width // 2
        upper = lower + attention_width
        indices = jnp.arange(T)[:, None]
        mask = jnp.logical_and(lower <= indices, indices < upper)
        e = jnp.where(mask, e, jnp.zeros_like(e))
    a = e / (jnp.sum(e, axis=-1, keepdims=True) + eps)
    v = jnp.matmul(a, xt)
    return jnp.transpose(v, (0, 2, 1)), a


if __name__ == "__main__":
    key = jax.random.PRNGKey(0)
    kx, kwx, kwt, kwa, kx2, kbh, kx3 = jax.random.split(key, 7)

    B, C, T, U = 2, 4, 8, 32          # batch, input_size (channels), seq len, units
    x = jax.random.normal(kx, (B, C, T), dtype=jnp.float32)
    Wx = jax.random.uniform(kwx, (C, U), minval=-0.02, maxval=0.02, dtype=jnp.float32)
    Wt = jax.random.uniform(kwt, (C, U), minval=-0.02, maxval=0.02, dtype=jnp.float32)
    bh = jnp.zeros((U,), dtype=jnp.float32)
    Wa = jax.random.uniform(kwa, (U, 1), minval=-0.02, maxval=0.02, dtype=jnp.float32)
    ba = jnp.zeros((1,), dtype=jnp.float32)

    # 1) full attention, exact f32 path
    v, a = seq_self_attention(x, Wx, Wt, bh, Wa, ba, tanh_dtype=jnp.float32)
    jax.block_until_ready((v, a))
    v_r, a_r = _reference(x, Wx, Wt, bh, Wa, ba)
    assert jnp.allclose(v, v_r, atol=1e-5, rtol=1e-5)
    assert jnp.allclose(a, a_r, atol=1e-5, rtol=1e-5)

    # 2) windowed attention, exact f32 path
    v_w, a_w = seq_self_attention(x, Wx, Wt, bh, Wa, ba, attention_width=4,
                                  tanh_dtype=jnp.float32)
    jax.block_until_ready((v_w, a_w))
    v_wr, a_wr = _reference(x, Wx, Wt, bh, Wa, ba, attention_width=4)
    assert jnp.allclose(v_w, v_wr, atol=1e-5, rtol=1e-5)
    assert jnp.allclose(a_w, a_wr, atol=1e-5, rtol=1e-5)

    # 3) T not a multiple of the tile, several query tiles, non-zero biases, windowed
    T2 = 20
    x2 = jax.random.normal(kx2, (B, C, T2), dtype=jnp.float32)
    bh2 = jax.random.uniform(kbh, (U,), minval=-0.02, maxval=0.02, dtype=jnp.float32)
    ba2 = jnp.array([0.01], dtype=jnp.float32)
    v2, a2 = seq_self_attention(x2, Wx, Wt, bh2, Wa, ba2, attention_width=5, q_tile=8,
                                tanh_dtype=jnp.float32)
    jax.block_until_ready((v2, a2))
    v2r, a2r = _reference(x2, Wx, Wt, bh2, Wa, ba2, attention_width=5)
    assert jnp.allclose(v2, v2r, atol=1e-5, rtol=1e-5)
    assert jnp.allclose(a2, a2r, atol=1e-5, rtol=1e-5)

    # 4) long sequence: exercises the key-chunked accumulator path (n_kc > 1), exact f32
    T3 = 300
    x3 = jax.random.normal(kx3, (1, C, T3), dtype=jnp.float32)
    v3, a3 = seq_self_attention(x3, Wx, Wt, bh2, Wa, ba2, tanh_dtype=jnp.float32)
    jax.block_until_ready((v3, a3))
    v3r, a3r = _reference(x3, Wx, Wt, bh2, Wa, ba2)
    assert jnp.allclose(v3, v3r, atol=1e-5, rtol=1e-5)
    assert jnp.allclose(a3, a3r, atol=1e-5, rtol=1e-5)

    # 5) long sequence + window + dead-chunk skipping (eps-level max perturbation only)
    v3w, a3w = seq_self_attention(x3, Wx, Wt, bh2, Wa, ba2, attention_width=31,
                                  window_skip=True, tanh_dtype=jnp.float32)
    jax.block_until_ready((v3w, a3w))
    v3wr, a3wr = _reference(x3, Wx, Wt, bh2, Wa, ba2, attention_width=31)
    assert jnp.allclose(v3w, v3wr, atol=1e-4, rtol=1e-4)
    assert jnp.allclose(a3w, a3wr, atol=1e-4, rtol=1e-4)

    # 6) low-precision fast path: auto tanh dtype (bf16 on v6e/v7x), bf16 value matmul,
    #    bf16 attention-map output; looser tolerance by construction.
    v_b, a_b = seq_self_attention(x, Wx, Wt, bh, Wa, ba, tanh_dtype=None,
                                  matmul_dtype=jnp.bfloat16, a_dtype=jnp.bfloat16)
    jax.block_until_ready((v_b, a_b))
    assert jnp.allclose(v_b, v_r, atol=2e-2, rtol=2e-2)
    assert jnp.allclose(a_b.astype(jnp.float32), a_r, atol=2e-2, rtol=2e-2)

    print("KERNEL_OK")
</pallas_src>

<mosaic_0001>
module attributes {stable_mosaic.version = 11 : i64} {
  func.func @_seq_self_attn_kernel(%arg0: i32, %arg1: i32, %arg2: memref<1x8x32xf32, #tpu.memory_space<vmem>>, %arg3: memref<1x1x32x8xf32, #tpu.memory_space<vmem>>, %arg4: memref<1x8x4xf32, #tpu.memory_space<vmem>>, %arg5: memref<32xf32, #tpu.memory_space<smem>>, %arg6: memref<1xf32, #tpu.memory_space<smem>>, %arg7: memref<1x8x4xf32, #tpu.memory_space<vmem>>, %arg8: memref<1x8x8xf32, #tpu.memory_space<vmem>>) attributes {dimension_semantics = [#tpu.dimension_semantics<parallel>, #tpu.dimension_semantics<parallel>], iteration_bounds = array<i64: 2, 1>, scalar_prefetch = 0 : i64, scratch_operands = 0 : i64, tpu.core_type = #tpu.core_type<tc>, window_params = [{transform_indices = @transform_0, window_bounds = array<i64: 1, 8, 32>}, {transform_indices = @transform_1, window_bounds = array<i64: 1, 1, 32, 8>}, {transform_indices = @transform_2, window_bounds = array<i64: 1, 8, 4>}, {transform_indices = @transform_3, window_bounds = array<i64: 32>}, {transform_indices = @transform_4, window_bounds = array<i64: 1>}, {transform_indices = @transform_5, window_bounds = array<i64: 1, 8, 4>}, {transform_indices = @transform_6, window_bounds = array<i64: 1, 8, 8>}]} {
    %c0 = arith.constant 0 : index
    %c0_0 = arith.constant 0 : index
    %c0_1 = arith.constant 0 : index
    %0 = vector.load %arg2[%c0, %c0_0, %c0_1] : memref<1x8x32xf32, #tpu.memory_space<vmem>>, vector<1x8x32xf32>
    %1 = vector.shape_cast %0 : vector<1x8x32xf32> to vector<8x32xf32>
    %c0_2 = arith.constant 0 : index
    %2 = memref.load %arg6[%c0_2] : memref<1xf32, #tpu.memory_space<smem>>
    %c0_3 = arith.constant 0 : index
    %c0_4 = arith.constant 0 : index
    %c0_5 = arith.constant 0 : index
    %c0_6 = arith.constant 0 : index
    %3 = vector.load %arg3[%c0_3, %c0_4, %c0_5, %c0_6] : memref<1x1x32x8xf32, #tpu.memory_space<vmem>>, vector<1x1x32x8xf32>
    %4 = vector.shape_cast %3 : vector<1x1x32x8xf32> to vector<32x8xf32>
    %5 = vector.broadcast %2 : f32 to vector<8x8xf32>
    %6 = vector.extract_strided_slice %1 {offsets = [0, 0], sizes = [8, 1], strides = [1, 1]} : vector<8x32xf32> to vector<8x1xf32>
    %7 = vector.extract_strided_slice %4 {offsets = [0, 0], sizes = [1, 8], strides = [1, 1]} : vector<32x8xf32> to vector<1x8xf32>
    %8 = vector.broadcast %6 : vector<8x1xf32> to vector<8x8xf32>
    %9 = vector.broadcast %7 : vector<1x8xf32> to vector<8x8xf32>
    %10 = arith.addf %8, %9 : vector<8x8xf32>
    %11 = math.tanh %10 : vector<8x8xf32>
    %c0_7 = arith.constant 0 : index
    %12 = memref.load %arg5[%c0_7] : memref<32xf32, #tpu.memory_space<smem>>
    %13 = vector.broadcast %12 : f32 to vector<8x8xf32>
    %14 = arith.mulf %13, %11 : vector<8x8xf32>
    %15 = arith.addf %5, %14 : vector<8x8xf32>
    %16 = vector.extract_strided_slice %1 {offsets = [0, 1], sizes = [8, 1], strides = [1, 1]} : vector<8x32xf32> to vector<8x1xf32>
    %17 = vector.extract_strided_slice %4 {offsets = [1, 0], sizes = [1, 8], strides = [1, 1]} : vector<32x8xf32> to vector<1x8xf32>
    %18 = vector.broadcast %16 : vector<8x1xf32> to vector<8x8xf32>
    %19 = vector.broadcast %17 : vector<1x8xf32> to vector<8x8xf32>
    %20 = arith.addf %18, %19 : vector<8x8xf32>
    %21 = math.tanh %20 : vector<8x8xf32>
    %c1 = arith.constant 1 : index
    %22 = memref.load %arg5[%c1] : memref<32xf32, #tpu.memory_space<smem>>
    %23 = vector.broadcast %22 : f32 to vector<8x8xf32>
    %24 = arith.mulf %23, %21 : vector<8x8xf32>
    %25 = arith.addf %15, %24 : vector<8x8xf32>
    %26 = vector.extract_strided_slice %1 {offsets = [0, 2], sizes = [8, 1], strides = [1, 1]} : vector<8x32xf32> to vector<8x1xf32>
    %27 = vector.extract_strided_slice %4 {offsets = [2, 0], sizes = [1, 8], strides = [1, 1]} : vector<32x8xf32> to vector<1x8xf32>
    %28 = vector.broadcast %26 : vector<8x1xf32> to vector<8x8xf32>
    %29 = vector.broadcast %27 : vector<1x8xf32> to vector<8x8xf32>
    %30 = arith.addf %28, %29 : vector<8x8xf32>
    %31 = math.tanh %30 : vector<8x8xf32>
    %c2 = arith.constant 2 : index
    %32 = memref.load %arg5[%c2] : memref<32xf32, #tpu.memory_space<smem>>
    %33 = vector.broadcast %32 : f32 to vector<8x8xf32>
    %34 = arith.mulf %33, %31 : vector<8x8xf32>
    %35 = arith.addf %25, %34 : vector<8x8xf32>
    %36 = vector.extract_strided_slice %1 {offsets = [0, 3], sizes = [8, 1], strides = [1, 1]} : vector<8x32xf32> to vector<8x1xf32>
    %37 = vector.extract_strided_slice %4 {offsets = [3, 0], sizes = [1, 8], strides = [1, 1]} : vector<32x8xf32> to vector<1x8xf32>
    %38 = vector.broadcast %36 : vector<8x1xf32> to vector<8x8xf32>
    %39 = vector.broadcast %37 : vector<1x8xf32> to vector<8x8xf32>
    %40 = arith.addf %38, %39 : vector<8x8xf32>
    %41 = math.tanh %40 : vector<8x8xf32>
    %c3 = arith.constant 3 : index
    %42 = memref.load %arg5[%c3] : memref<32xf32, #tpu.memory_space<smem>>
    %43 = vector.broadcast %42 : f32 to vector<8x8xf32>
    %44 = arith.mulf %43, %41 : vector<8x8xf32>
    %45 = arith.addf %35, %44 : vector<8x8xf32>
    %46 = vector.extract_strided_slice %1 {offsets = [0, 4], sizes = [8, 1], strides = [1, 1]} : vector<8x32xf32> to vector<8x1xf32>
    %47 = vector.extract_strided_slice %4 {offsets = [4, 0], sizes = [1, 8], strides = [1, 1]} : vector<32x8xf32> to vector<1x8xf32>
    %48 = vector.broadcast %46 : vector<8x1xf32> to vector<8x8xf32>
    %49 = vector.broadcast %47 : vector<1x8xf32> to vector<8x8xf32>
    %50 = arith.addf %48, %49 : vector<8x8xf32>
    %51 = math.tanh %50 : vector<8x8xf32>
    %c4 = arith.constant 4 : index
    %52 = memref.load %arg5[%c4] : memref<32xf32, #tpu.memory_space<smem>>
    %53 = vector.broadcast %52 : f32 to vector<8x8xf32>
    %54 = arith.mulf %53, %51 : vector<8x8xf32>
    %55 = arith.addf %45, %54 : vector<8x8xf32>
    %56 = vector.extract_strided_slice %1 {offsets = [0, 5], sizes = [8, 1], strides = [1, 1]} : vector<8x32xf32> to vector<8x1xf32>
    %57 = vector.extract_strided_slice %4 {offsets = [5, 0], sizes = [1, 8], strides = [1, 1]} : vector<32x8xf32> to vector<1x8xf32>
    %58 = vector.broadcast %56 : vector<8x1xf32> to vector<8x8xf32>
    %59 = vector.broadcast %57 : vector<1x8xf32> to vector<8x8xf32>
    %60 = arith.addf %58, %59 : vector<8x8xf32>
    %61 = math.tanh %60 : vector<8x8xf32>
    %c5 = arith.constant 5 : index
    %62 = memref.load %arg5[%c5] : memref<32xf32, #tpu.memory_space<smem>>
    %63 = vector.broadcast %62 : f32 to vector<8x8xf32>
    %64 = arith.mulf %63, %61 : vector<8x8xf32>
    %65 = arith.addf %55, %64 : vector<8x8xf32>
    %66 = vector.extract_strided_slice %1 {offsets = [0, 6], sizes = [8, 1], strides = [1, 1]} : vector<8x32xf32> to vector<8x1xf32>
    %67 = vector.extract_strided_slice %4 {offsets = [6, 0], sizes = [1, 8], strides = [1, 1]} : vector<32x8xf32> to vector<1x8xf32>
    %68 = vector.broadcast %66 : vector<8x1xf32> to vector<8x8xf32>
    %69 = vector.broadcast %67 : vector<1x8xf32> to vector<8x8xf32>
    %70 = arith.addf %68, %69 : vector<8x8xf32>
    %71 = math.tanh %70 : vector<8x8xf32>
    %c6 = arith.constant 6 : index
    %72 = memref.load %arg5[%c6] : memref<32xf32, #tpu.memory_space<smem>>
    %73 = vector.broadcast %72 : f32 to vector<8x8xf32>
    %74 = arith.mulf %73, %71 : vector<8x8xf32>
    %75 = arith.addf %65, %74 : vector<8x8xf32>
    %76 = vector.extract_strided_slice %1 {offsets = [0, 7], sizes = [8, 1], strides = [1, 1]} : vector<8x32xf32> to vector<8x1xf32>
    %77 = vector.extract_strided_slice %4 {offsets = [7, 0], sizes = [1, 8], strides = [1, 1]} : vector<32x8xf32> to vector<1x8xf32>
    %78 = vector.broadcast %76 : vector<8x1xf32> to vector<8x8xf32>
    %79 = vector.broadcast %77 : vector<1x8xf32> to vector<8x8xf32>
    %80 = arith.addf %78, %79 : vector<8x8xf32>
    %81 = math.tanh %80 : vector<8x8xf32>
    %c7 = arith.constant 7 : index
    %82 = memref.load %arg5[%c7] : memref<32xf32, #tpu.memory_space<smem>>
    %83 = vector.broadcast %82 : f32 to vector<8x8xf32>
    %84 = arith.mulf %83, %81 : vector<8x8xf32>
    %85 = arith.addf %75, %84 : vector<8x8xf32>
    %86 = vector.extract_strided_slice %1 {offsets = [0, 8], sizes = [8, 1], strides = [1, 1]} : vector<8x32xf32> to vector<8x1xf32>
    %87 = vector.extract_strided_slice %4 {offsets = [8, 0], sizes = [1, 8], strides = [1, 1]} : vector<32x8xf32> to vector<1x8xf32>
    %88 = vector.broadcast %86 : vector<8x1xf32> to vector<8x8xf32>
    %89 = vector.broadcast %87 : vector<1x8xf32> to vector<8x8xf32>
    %90 = arith.addf %88, %89 : vector<8x8xf32>
    %91 = math.tanh %90 : vector<8x8xf32>
    %c8 = arith.constant 8 : index
    %92 = memref.load %arg5[%c8] : memref<32xf32, #tpu.memory_space<smem>>
    %93 = vector.broadcast %92 : f32 to vector<8x8xf32>
    %94 = arith.mulf %93, %91 : vector<8x8xf32>
    %95 = arith.addf %85, %94 : vector<8x8xf32>
    %96 = vector.extract_strided_slice %1 {offsets = [0, 9], sizes = [8, 1], strides = [1, 1]} : vector<8x32xf32> to vector<8x1xf32>
    %97 = vector.extract_strided_slice %4 {offsets = [9, 0], sizes = [1, 8], strides = [1, 1]} : vector<32x8xf32> to vector<1x8xf32>
    %98 = vector.broadcast %96 : vector<8x1xf32> to vector<8x8xf32>
    %99 = vector.broadcast %97 : vector<1x8xf32> to vector<8x8xf32>
    %100 = arith.addf %98, %99 : vector<8x8xf32>
    %101 = math.tanh %100 : vector<8x8xf32>
    %c9 = arith.constant 9 : index
    %102 = memref.load %arg5[%c9] : memref<32xf32, #tpu.memory_space<smem>>
    %103 = vector.broadcast %102 : f32 to vector<8x8xf32>
    %104 = arith.mulf %103, %101 : vector<8x8xf32>
    %105 = arith.addf %95, %104 : vector<8x8xf32>
    %106 = vector.extract_strided_slice %1 {offsets = [0, 10], sizes = [8, 1], strides = [1, 1]} : vector<8x32xf32> to vector<8x1xf32>
    %107 = vector.extract_strided_slice %4 {offsets = [10, 0], sizes = [1, 8], strides = [1, 1]} : vector<32x8xf32> to vector<1x8xf32>
    %108 = vector.broadcast %106 : vector<8x1xf32> to vector<8x8xf32>
    %109 = vector.broadcast %107 : vector<1x8xf32> to vector<8x8xf32>
    %110 = arith.addf %108, %109 : vector<8x8xf32>
    %111 = math.tanh %110 : vector<8x8xf32>
    %c10 = arith.constant 10 : index
    %112 = memref.load %arg5[%c10] : memref<32xf32, #tpu.memory_space<smem>>
    %113 = vector.broadcast %112 : f32 to vector<8x8xf32>
    %114 = arith.mulf %113, %111 : vector<8x8xf32>
    %115 = arith.addf %105, %114 : vector<8x8xf32>
    %116 = vector.extract_strided_slice %1 {offsets = [0, 11], sizes = [8, 1], strides = [1, 1]} : vector<8x32xf32> to vector<8x1xf32>
    %117 = vector.extract_strided_slice %4 {offsets = [11, 0], sizes = [1, 8], strides = [1, 1]} : vector<32x8xf32> to vector<1x8xf32>
    %118 = vector.broadcast %116 : vector<8x1xf32> to vector<8x8xf32>
    %119 = vector.broadcast %117 : vector<1x8xf32> to vector<8x8xf32>
    %120 = arith.addf %118, %119 : vector<8x8xf32>
    %121 = math.tanh %120 : vector<8x8xf32>
    %c11 = arith.constant 11 : index
    %122 = memref.load %arg5[%c11] : memref<32xf32, #tpu.memory_space<smem>>
    %123 = vector.broadcast %122 : f32 to vector<8x8xf32>
    %124 = arith.mulf %123, %121 : vector<8x8xf32>
    %125 = arith.addf %115, %124 : vector<8x8xf32>
    %126 = vector.extract_strided_slice %1 {offsets = [0, 12], sizes = [8, 1], strides = [1, 1]} : vector<8x32xf32> to vector<8x1xf32>
    %127 = vector.extract_strided_slice %4 {offsets = [12, 0], sizes = [1, 8], strides = [1, 1]} : vector<32x8xf32> to vector<1x8xf32>
    %128 = vector.broadcast %126 : vector<8x1xf32> to vector<8x8xf32>
    %129 = vector.broadcast %127 : vector<1x8xf32> to vector<8x8xf32>
    %130 = arith.addf %128, %129 : vector<8x8xf32>
    %131 = math.tanh %130 : vector<8x8xf32>
    %c12 = arith.constant 12 : index
    %132 = memref.load %arg5[%c12] : memref<32xf32, #tpu.memory_space<smem>>
    %133 = vector.broadcast %132 : f32 to vector<8x8xf32>
    %134 = arith.mulf %133, %131 : vector<8x8xf32>
    %135 = arith.addf %125, %134 : vector<8x8xf32>
    %136 = vector.extract_strided_slice %1 {offsets = [0, 13], sizes = [8, 1], strides = [1, 1]} : vector<8x32xf32> to vector<8x1xf32>
    %137 = vector.extract_strided_slice %4 {offsets = [13, 0], sizes = [1, 8], strides = [1, 1]} : vector<32x8xf32> to vector<1x8xf32>
    %138 = vector.broadcast %136 : vector<8x1xf32> to vector<8x8xf32>
    %139 = vector.broadcast %137 : vector<1x8xf32> to vector<8x8xf32>
    %140 = arith.addf %138, %139 : vector<8x8xf32>
    %141 = math.tanh %140 : vector<8x8xf32>
    %c13 = arith.constant 13 : index
    %142 = memref.load %arg5[%c13] : memref<32xf32, #tpu.memory_space<smem>>
    %143 = vector.broadcast %142 : f32 to vector<8x8xf32>
    %144 = arith.mulf %143, %141 : vector<8x8xf32>
    %145 = arith.addf %135, %144 : vector<8x8xf32>
    %146 = vector.extract_strided_slice %1 {offsets = [0, 14], sizes = [8, 1], strides = [1, 1]} : vector<8x32xf32> to vector<8x1xf32>
    %147 = vector.extract_strided_slice %4 {offsets = [14, 0], sizes = [1, 8], strides = [1, 1]} : vector<32x8xf32> to vector<1x8xf32>
    %148 = vector.broadcast %146 : vector<8x1xf32> to vector<8x8xf32>
    %149 = vector.broadcast %147 : vector<1x8xf32> to vector<8x8xf32>
    %150 = arith.addf %148, %149 : vector<8x8xf32>
    %151 = math.tanh %150 : vector<8x8xf32>
    %c14 = arith.constant 14 : index
    %152 = memref.load %arg5[%c14] : memref<32xf32, #tpu.memory_space<smem>>
    %153 = vector.broadcast %152 : f32 to vector<8x8xf32>
    %154 = arith.mulf %153, %151 : vector<8x8xf32>
    %155 = arith.addf %145, %154 : vector<8x8xf32>
    %156 = vector.extract_strided_slice %1 {offsets = [0, 15], sizes = [8, 1], strides = [1, 1]} : vector<8x32xf32> to vector<8x1xf32>
    %157 = vector.extract_strided_slice %4 {offsets = [15, 0], sizes = [1, 8], strides = [1, 1]} : vector<32x8xf32> to vector<1x8xf32>
    %158 = vector.broadcast %156 : vector<8x1xf32> to vector<8x8xf32>
    %159 = vector.broadcast %157 : vector<1x8xf32> to vector<8x8xf32>
    %160 = arith.addf %158, %159 : vector<8x8xf32>
    %161 = math.tanh %160 : vector<8x8xf32>
    %c15 = arith.constant 15 : index
    %162 = memref.load %arg5[%c15] : memref<32xf32, #tpu.memory_space<smem>>
    %163 = vector.broadcast %162 : f32 to vector<8x8xf32>
    %164 = arith.mulf %163, %161 : vector<8x8xf32>
    %165 = arith.addf %155, %164 : vector<8x8xf32>
    %166 = vector.extract_strided_slice %1 {offsets = [0, 16], sizes = [8, 1], strides = [1, 1]} : vector<8x32xf32> to vector<8x1xf32>
    %167 = vector.extract_strided_slice %4 {offsets = [16, 0], sizes = [1, 8], strides = [1, 1]} : vector<32x8xf32> to vector<1x8xf32>
    %168 = vector.broadcast %166 : vector<8x1xf32> to vector<8x8xf32>
    %169 = vector.broadcast %167 : vector<1x8xf32> to vector<8x8xf32>
    %170 = arith.addf %168, %169 : vector<8x8xf32>
    %171 = math.tanh %170 : vector<8x8xf32>
    %c16 = arith.constant 16 : index
    %172 = memref.load %arg5[%c16] : memref<32xf32, #tpu.memory_space<smem>>
    %173 = vector.broadcast %172 : f32 to vector<8x8xf32>
    %174 = arith.mulf %173, %171 : vector<8x8xf32>
    %175 = arith.addf %165, %174 : vector<8x8xf32>
    %176 = vector.extract_strided_slice %1 {offsets = [0, 17], sizes = [8, 1], strides = [1, 1]} : vector<8x32xf32> to vector<8x1xf32>
    %177 = vector.extract_strided_slice %4 {offsets = [17, 0], sizes = [1, 8], strides = [1, 1]} : vector<32x8xf32> to vector<1x8xf32>
    %178 = vector.broadcast %176 : vector<8x1xf32> to vector<8x8xf32>
    %179 = vector.broadcast %177 : vector<1x8xf32> to vector<8x8xf32>
    %180 = arith.addf %178, %179 : vector<8x8xf32>
    %181 = math.tanh %180 : vector<8x8xf32>
    %c17 = arith.constant 17 : index
    %182 = memref.load %arg5[%c17] : memref<32xf32, #tpu.memory_space<smem>>
    %183 = vector.broadcast %182 : f32 to vector<8x8xf32>
    %184 = arith.mulf %183, %181 : vector<8x8xf32>
    %185 = arith.addf %175, %184 : vector<8x8xf32>
    %186 = vector.extract_strided_slice %1 {offsets = [0, 18], sizes = [8, 1], strides = [1, 1]} : vector<8x32xf32> to vector<8x1xf32>
    %187 = vector.extract_strided_slice %4 {offsets = [18, 0], sizes = [1, 8], strides = [1, 1]} : vector<32x8xf32> to vector<1x8xf32>
    %188 = vector.broadcast %186 : vector<8x1xf32> to vector<8x8xf32>
    %189 = vector.broadcast %187 : vector<1x8xf32> to vector<8x8xf32>
    %190 = arith.addf %188, %189 : vector<8x8xf32>
    %191 = math.tanh %190 : vector<8x8xf32>
    %c18 = arith.constant 18 : index
    %192 = memref.load %arg5[%c18] : memref<32xf32, #tpu.memory_space<smem>>
    %193 = vector.broadcast %192 : f32 to vector<8x8xf32>
    %194 = arith.mulf %193, %191 : vector<8x8xf32>
    %195 = arith.addf %185, %194 : vector<8x8xf32>
    %196 = vector.extract_strided_slice %1 {offsets = [0, 19], sizes = [8, 1], strides = [1, 1]} : vector<8x32xf32> to vector<8x1xf32>
    %197 = vector.extract_strided_slice %4 {offsets = [19, 0], sizes = [1, 8], strides = [1, 1]} : vector<32x8xf32> to vector<1x8xf32>
    %198 = vector.broadcast %196 : vector<8x1xf32> to vector<8x8xf32>
    %199 = vector.broadcast %197 : vector<1x8xf32> to vector<8x8xf32>
    %200 = arith.addf %198, %199 : vector<8x8xf32>
    %201 = math.tanh %200 : vector<8x8xf32>
    %c19 = arith.constant 19 : index
    %202 = memref.load %arg5[%c19] : memref<32xf32, #tpu.memory_space<smem>>
    %203 = vector.broadcast %202 : f32 to vector<8x8xf32>
    %204 = arith.mulf %203, %201 : vector<8x8xf32>
    %205 = arith.addf %195, %204 : vector<8x8xf32>
    %206 = vector.extract_strided_slice %1 {offsets = [0, 20], sizes = [8, 1], strides = [1, 1]} : vector<8x32xf32> to vector<8x1xf32>
    %207 = vector.extract_strided_slice %4 {offsets = [20, 0], sizes = [1, 8], strides = [1, 1]} : vector<32x8xf32> to vector<1x8xf32>
    %208 = vector.broadcast %206 : vector<8x1xf32> to vector<8x8xf32>
    %209 = vector.broadcast %207 : vector<1x8xf32> to vector<8x8xf32>
    %210 = arith.addf %208, %209 : vector<8x8xf32>
    %211 = math.tanh %210 : vector<8x8xf32>
    %c20 = arith.constant 20 : index
    %212 = memref.load %arg5[%c20] : memref<32xf32, #tpu.memory_space<smem>>
    %213 = vector.broadcast %212 : f32 to vector<8x8xf32>
    %214 = arith.mulf %213, %211 : vector<8x8xf32>
    %215 = arith.addf %205, %214 : vector<8x8xf32>
    %216 = vector.extract_strided_slice %1 {offsets = [0, 21], sizes = [8, 1], strides = [1, 1]} : vector<8x32xf32> to vector<8x1xf32>
    %217 = vector.extract_strided_slice %4 {offsets = [21, 0], sizes = [1, 8], strides = [1, 1]} : vector<32x8xf32> to vector<1x8xf32>
    %218 = vector.broadcast %216 : vector<8x1xf32> to vector<8x8xf32>
    %219 = vector.broadcast %217 : vector<1x8xf32> to vector<8x8xf32>
    %220 = arith.addf %218, %219 : vector<8x8xf32>
    %221 = math.tanh %220 : vector<8x8xf32>
    %c21 = arith.constant 21 : index
    %222 = memref.load %arg5[%c21] : memref<32xf32, #tpu.memory_space<smem>>
    %223 = vector.broadcast %222 : f32 to vector<8x8xf32>
    %224 = arith.mulf %223, %221 : vector<8x8xf32>
    %225 = arith.addf %215, %224 : vector<8x8xf32>
    %226 = vector.extract_strided_slice %1 {offsets = [0, 22], sizes = [8, 1], strides = [1, 1]} : vector<8x32xf32> to vector<8x1xf32>
    %227 = vector.extract_strided_slice %4 {offsets = [22, 0], sizes = [1, 8], strides = [1, 1]} : vector<32x8xf32> to vector<1x8xf32>
    %228 = vector.broadcast %226 : vector<8x1xf32> to vector<8x8xf32>
    %229 = vector.broadcast %227 : vector<1x8xf32> to vector<8x8xf32>
    %230 = arith.addf %228, %229 : vector<8x8xf32>
    %231 = math.tanh %230 : vector<8x8xf32>
    %c22 = arith.constant 22 : index
    %232 = memref.load %arg5[%c22] : memref<32xf32, #tpu.memory_space<smem>>
    %233 = vector.broadcast %232 : f32 to vector<8x8xf32>
    %234 = arith.mulf %233, %231 : vector<8x8xf32>
    %235 = arith.addf %225, %234 : vector<8x8xf32>
    %236 = vector.extract_strided_slice %1 {offsets = [0, 23], sizes = [8, 1], strides = [1, 1]} : vector<8x32xf32> to vector<8x1xf32>
    %237 = vector.extract_strided_slice %4 {offsets = [23, 0], sizes = [1, 8], strides = [1, 1]} : vector<32x8xf32> to vector<1x8xf32>
    %238 = vector.broadcast %236 : vector<8x1xf32> to vector<8x8xf32>
    %239 = vector.broadcast %237 : vector<1x8xf32> to vector<8x8xf32>
    %240 = arith.addf %238, %239 : vector<8x8xf32>
    %241 = math.tanh %240 : vector<8x8xf32>
    %c23 = arith.constant 23 : index
    %242 = memref.load %arg5[%c23] : memref<32xf32, #tpu.memory_space<smem>>
    %243 = vector.broadcast %242 : f32 to vector<8x8xf32>
    %244 = arith.mulf %243, %241 : vector<8x8xf32>
    %245 = arith.addf %235, %244 : vector<8x8xf32>
    %246 = vector.extract_strided_slice %1 {offsets = [0, 24], sizes = [8, 1], strides = [1, 1]} : vector<8x32xf32> to vector<8x1xf32>
    %247 = vector.extract_strided_slice %4 {offsets = [24, 0], sizes = [1, 8], strides = [1, 1]} : vector<32x8xf32> to vector<1x8xf32>
    %248 = vector.broadcast %246 : vector<8x1xf32> to vector<8x8xf32>
    %249 = vector.broadcast %247 : vector<1x8xf32> to vector<8x8xf32>
    %250 = arith.addf %248, %249 : vector<8x8xf32>
    %251 = math.tanh %250 : vector<8x8xf32>
    %c24 = arith.constant 24 : index
    %252 = memref.load %arg5[%c24] : memref<32xf32, #tpu.memory_space<smem>>
    %253 = vector.broadcast %252 : f32 to vector<8x8xf32>
    %254 = arith.mulf %253, %251 : vector<8x8xf32>
    %255 = arith.addf %245, %254 : vector<8x8xf32>
    %256 = vector.extract_strided_slice %1 {offsets = [0, 25], sizes = [8, 1], strides = [1, 1]} : vector<8x32xf32> to vector<8x1xf32>
    %257 = vector.extract_strided_slice %4 {offsets = [25, 0], sizes = [1, 8], strides = [1, 1]} : vector<32x8xf32> to vector<1x8xf32>
    %258 = vector.broadcast %256 : vector<8x1xf32> to vector<8x8xf32>
    %259 = vector.broadcast %257 : vector<1x8xf32> to vector<8x8xf32>
    %260 = arith.addf %258, %259 : vector<8x8xf32>
    %261 = math.tanh %260 : vector<8x8xf32>
    %c25 = arith.constant 25 : index
    %262 = memref.load %arg5[%c25] : memref<32xf32, #tpu.memory_space<smem>>
    %263 = vector.broadcast %262 : f32 to vector<8x8xf32>
    %264 = arith.mulf %263, %261 : vector<8x8xf32>
    %265 = arith.addf %255, %264 : vector<8x8xf32>
    %266 = vector.extract_strided_slice %1 {offsets = [0, 26], sizes = [8, 1], strides = [1, 1]} : vector<8x32xf32> to vector<8x1xf32>
    %267 = vector.extract_strided_slice %4 {offsets = [26, 0], sizes = [1, 8], strides = [1, 1]} : vector<32x8xf32> to vector<1x8xf32>
    %268 = vector.broadcast %266 : vector<8x1xf32> to vector<8x8xf32>
    %269 = vector.broadcast %267 : vector<1x8xf32> to vector<8x8xf32>
    %270 = arith.addf %268, %269 : vector<8x8xf32>
    %271 = math.tanh %270 : vector<8x8xf32>
    %c26 = arith.constant 26 : index
    %272 = memref.load %arg5[%c26] : memref<32xf32, #tpu.memory_space<smem>>
    %273 = vector.broadcast %272 : f32 to vector<8x8xf32>
    %274 = arith.mulf %273, %271 : vector<8x8xf32>
    %275 = arith.addf %265, %274 : vector<8x8xf32>
    %276 = vector.extract_strided_slice %1 {offsets = [0, 27], sizes = [8, 1], strides = [1, 1]} : vector<8x32xf32> to vector<8x1xf32>
    %277 = vector.extract_strided_slice %4 {offsets = [27, 0], sizes = [1, 8], strides = [1, 1]} : vector<32x8xf32> to vector<1x8xf32>
    %278 = vector.broadcast %276 : vector<8x1xf32> to vector<8x8xf32>
    %279 = vector.broadcast %277 : vector<1x8xf32> to vector<8x8xf32>
    %280 = arith.addf %278, %279 : vector<8x8xf32>
    %281 = math.tanh %280 : vector<8x8xf32>
    %c27 = arith.constant 27 : index
    %282 = memref.load %arg5[%c27] : memref<32xf32, #tpu.memory_space<smem>>
    %283 = vector.broadcast %282 : f32 to vector<8x8xf32>
    %284 = arith.mulf %283, %281 : vector<8x8xf32>
    %285 = arith.addf %275, %284 : vector<8x8xf32>
    %286 = vector.extract_strided_slice %1 {offsets = [0, 28], sizes = [8, 1], strides = [1, 1]} : vector<8x32xf32> to vector<8x1xf32>
    %287 = vector.extract_strided_slice %4 {offsets = [28, 0], sizes = [1, 8], strides = [1, 1]} : vector<32x8xf32> to vector<1x8xf32>
    %288 = vector.broadcast %286 : vector<8x1xf32> to vector<8x8xf32>
    %289 = vector.broadcast %287 : vector<1x8xf32> to vector<8x8xf32>
    %290 = arith.addf %288, %289 : vector<8x8xf32>
    %291 = math.tanh %290 : vector<8x8xf32>
    %c28 = arith.constant 28 : index
    %292 = memref.load %arg5[%c28] : memref<32xf32, #tpu.memory_space<smem>>
    %293 = vector.broadcast %292 : f32 to vector<8x8xf32>
    %294 = arith.mulf %293, %291 : vector<8x8xf32>
    %295 = arith.addf %285, %294 : vector<8x8xf32>
    %296 = vector.extract_strided_slice %1 {offsets = [0, 29], sizes = [8, 1], strides = [1, 1]} : vector<8x32xf32> to vector<8x1xf32>
    %297 = vector.extract_strided_slice %4 {offsets = [29, 0], sizes = [1, 8], strides = [1, 1]} : vector<32x8xf32> to vector<1x8xf32>
    %298 = vector.broadcast %296 : vector<8x1xf32> to vector<8x8xf32>
    %299 = vector.broadcast %297 : vector<1x8xf32> to vector<8x8xf32>
    %300 = arith.addf %298, %299 : vector<8x8xf32>
    %301 = math.tanh %300 : vector<8x8xf32>
    %c29 = arith.constant 29 : index
    %302 = memref.load %arg5[%c29] : memref<32xf32, #tpu.memory_space<smem>>
    %303 = vector.broadcast %302 : f32 to vector<8x8xf32>
    %304 = arith.mulf %303, %301 : vector<8x8xf32>
    %305 = arith.addf %295, %304 : vector<8x8xf32>
    %306 = vector.extract_strided_slice %1 {offsets = [0, 30], sizes = [8, 1], strides = [1, 1]} : vector<8x32xf32> to vector<8x1xf32>
    %307 = vector.extract_strided_slice %4 {offsets = [30, 0], sizes = [1, 8], strides = [1, 1]} : vector<32x8xf32> to vector<1x8xf32>
    %308 = vector.broadcast %306 : vector<8x1xf32> to vector<8x8xf32>
    %309 = vector.broadcast %307 : vector<1x8xf32> to vector<8x8xf32>
    %310 = arith.addf %308, %309 : vector<8x8xf32>
    %311 = math.tanh %310 : vector<8x8xf32>
    %c30 = arith.constant 30 : index
    %312 = memref.load %arg5[%c30] : memref<32xf32, #tpu.memory_space<smem>>
    %313 = vector.broadcast %312 : f32 to vector<8x8xf32>
    %314 = arith.mulf %313, %311 : vector<8x8xf32>
    %315 = arith.addf %305, %314 : vector<8x8xf32>
    %316 = vector.extract_strided_slice %1 {offsets = [0, 31], sizes = [8, 1], strides = [1, 1]} : vector<8x32xf32> to vector<8x1xf32>
    %317 = vector.extract_strided_slice %4 {offsets = [31, 0], sizes = [1, 8], strides = [1, 1]} : vector<32x8xf32> to vector<1x8xf32>
    %318 = vector.broadcast %316 : vector<8x1xf32> to vector<8x8xf32>
    %319 = vector.broadcast %317 : vector<1x8xf32> to vector<8x8xf32>
    %320 = arith.addf %318, %319 : vector<8x8xf32>
    %321 = math.tanh %320 : vector<8x8xf32>
    %c31 = arith.constant 31 : index
    %322 = memref.load %arg5[%c31] : memref<32xf32, #tpu.memory_space<smem>>
    %323 = vector.broadcast %322 : f32 to vector<8x8xf32>
    %324 = arith.mulf %323, %321 : vector<8x8xf32>
    %325 = arith.addf %315, %324 : vector<8x8xf32>
    %cst = arith.constant dense<0xFF800000> : vector<8xf32>
    %326 = vector.multi_reduction <maximumf>, %325, %cst [1] : vector<8x8xf32> to vector<8xf32>
    %327 = vector.shape_cast %326 : vector<8xf32> to vector<8x1xf32>
    %328 = vector.broadcast %327 : vector<8x1xf32> to vector<8x8xf32>
    %329 = arith.subf %325, %328 : vector<8x8xf32>
    %330 = math.exp %329 : vector<8x8xf32>
    %cst_8 = arith.constant dense<0.000000e+00> : vector<8xf32>
    %331 = vector.multi_reduction <add>, %330, %cst_8 [1] : vector<8x8xf32> to vector<8xf32>
    %332 = vector.shape_cast %331 : vector<8xf32> to vector<8x1xf32>
    %cst_9 = arith.constant 9.99999974E-6 : f32
    %333 = vector.broadcast %cst_9 : f32 to vector<8x1xf32>
    %334 = arith.addf %332, %333 : vector<8x1xf32>
    %335 = tpu.reciprocal %334 : vector<8x1xf32> -> vector<8x1xf32>
    %336 = vector.broadcast %335 : vector<8x1xf32> to vector<8x8xf32>
    %337 = arith.mulf %330, %336 : vector<8x8xf32>
    %c0_10 = arith.constant 0 : index
    %c0_11 = arith.constant 0 : index
    %c0_12 = arith.constant 0 : index
    %338 = vector.load %arg8[%c0_10, %c0_11, %c0_12] : memref<1x8x8xf32, #tpu.memory_space<vmem>>, vector<1x8x8xf32>
    %339 = vector.shape_cast %338 : vector<1x8x8xf32> to vector<8x8xf32>
    %340 = vector.shape_cast %337 : vector<8x8xf32> to vector<1x8x8xf32>
    tpu.vector_store %arg8[%c0_10, %c0_11, %c0_12], %340 {strides = array<i32>} : memref<1x8x8xf32, #tpu.memory_space<vmem>>, vector<1x8x8xf32>,
    %c0_13 = arith.constant 0 : index
    %c0_14 = arith.constant 0 : index
    %c0_15 = arith.constant 0 : index
    %341 = vector.load %arg4[%c0_13, %c0_14, %c0_15] : memref<1x8x4xf32, #tpu.memory_space<vmem>>, vector<1x8x4xf32>
    %342 = vector.shape_cast %341 : vector<1x8x4xf32> to vector<8x4xf32>
    %cst_16 = arith.constant dense<0.000000e+00> : vector<8x4xf32>
    %343 = tpu.matmul %337, %342, %cst_16 {dimension_numbers = #tpu.dot_dimension_numbers<[1], [0], [0], [1], [0, 0, 1, 1], [], []>} : vector<8x8xf32>, vector<8x4xf32>, vector<8x4xf32> -> vector<8x4xf32>
    %c0_17 = arith.constant 0 : index
    %c0_18 = arith.constant 0 : index
    %c0_19 = arith.constant 0 : index
    %344 = vector.load %arg7[%c0_17, %c0_18, %c0_19] : memref<1x8x4xf32, #tpu.memory_space<vmem>>, vector<1x8x4xf32>
    %345 = vector.shape_cast %344 : vector<1x8x4xf32> to vector<8x4xf32>
    %346 = vector.shape_cast %343 : vector<8x4xf32> to vector<1x8x4xf32>
    tpu.vector_store %arg7[%c0_17, %c0_18, %c0_19], %346 {strides = array<i32>} : memref<1x8x4xf32, #tpu.memory_space<vmem>>, vector<1x8x4xf32>,
    return
  }
  func.func @transform_0(%arg0: i32, %arg1: i32) -> (i32, i32, i32) {
    %c0_i32 = arith.constant 0 : i32
    %c0_i32_0 = arith.constant 0 : i32
    return %arg0, %arg1, %c0_i32 : i32, i32, i32
  }
  func.func @transform_1(%arg0: i32, %arg1: i32) -> (i32, i32, i32, i32) {
    %c0_i32 = arith.constant 0 : i32
    %c0_i32_0 = arith.constant 0 : i32
    %c0_i32_1 = arith.constant 0 : i32
    %c0_i32_2 = arith.constant 0 : i32
    return %arg0, %c0_i32, %c0_i32_0, %c0_i32_1 : i32, i32, i32, i32
  }
  func.func @transform_2(%arg0: i32, %arg1: i32) -> (i32, i32, i32) {
    %c0_i32 = arith.constant 0 : i32
    %c0_i32_0 = arith.constant 0 : i32
    %c0_i32_1 = arith.constant 0 : i32
    return %arg0, %c0_i32, %c0_i32_0 : i32, i32, i32
  }
  func.func @transform_3(%arg0: i32, %arg1: i32) -> i32 {
    %c0_i32 = arith.constant 0 : i32
    %c0_i32_0 = arith.constant 0 : i32
    return %c0_i32 : i32
  }
  func.func @transform_4(%arg0: i32, %arg1: i32) -> i32 {
    %c0_i32 = arith.constant 0 : i32
    %c0_i32_0 = arith.constant 0 : i32
    return %c0_i32 : i32
  }
  func.func @transform_5(%arg0: i32, %arg1: i32) -> (i32, i32, i32) {
    %c0_i32 = arith.constant 0 : i32
    %c0_i32_0 = arith.constant 0 : i32
    return %arg0, %arg1, %c0_i32 : i32, i32, i32
  }
  func.func @transform_6(%arg0: i32, %arg1: i32) -> (i32, i32, i32) {
    %c0_i32 = arith.constant 0 : i32
    %c0_i32_0 = arith.constant 0 : i32
    return %arg0, %arg1, %c0_i32 : i32, i32, i32
  }
}

</mosaic_0001>

<bundles_post_ra>
// kernel: tpu_custom_call.1
= control target key start
LH: loop header
LB: loop body
LE: loop exit
PB: predicated region body
PF: predicated region fallthrough
CT: control target
= control target key end

     0   :  { %s2229_s0 = inlined_call_operand.hbm [shape: f32[2,8,32], index: 0, kind: input, shape index: {}]   ;;  %s2230_s1 = inlined_call_operand.hbm [shape: f32[2,1,32,8], index: 1, kind: input, shape index: {}]   ;;  %s2231_s2 = inlined_call_operand.hbm [shape: f32[2,8,4], index: 2, kind: input, shape index: {}]   ;;  %s2232_s3 = inlined_call_operand.hbm [shape: f32[32], index: 3, kind: input, shape index: {}]   ;;  %s2233_s4 = inlined_call_operand.<no memory space> [shape: f32[1], index: 4, kind: input, shape index: {}]   ;;  %s2234_s5 = inlined_call_operand.hbm [shape: f32[2,8,4], index: 5, kind: output, shape index: {0}]   ;;  %s2235_s6 = inlined_call_operand.hbm [shape: f32[2,8,8], index: 6, kind: output, shape index: {1}]  }
   0x1   :  { %2250 = sst [smem:[#allocation23_spill]] %s2230_s1 }
   0x2   :  { %12 = sst [smem:[#allocation2]] %s2233_s4 }
   0x3   :  { %13 = vsyncpa [#allocation4], 0 }
   0x4   :  { %15 = vsyncpa [#allocation4 + $0x1], 0 }
   0x5   :  { %16 = vsyncpa [#allocation8], 0 }
   0x6   :  { %18 = vsyncpa [#allocation8 + $0x1], 0 }
   0x7   :  { %19 = vsyncpa [#allocation6], 0 }
   0x8   :  { %20 = vsyncpa [#allocation5], 0 }
   0x9   :  { %22 = vsyncpa [#allocation5 + $0x1], 0 }
   0xa   :  { %23 = vsyncpa [#allocation13], 0 }
   0xb   :  { %25 = vsyncpa [#allocation13 + $0x1], 0  ;;  %s1729_s23 = smov 0   ;;  %s1731_s24 = smov 0  }
   0xc   :  { %s1733_s25 = smov 0   ;;  %s1735_s26 = smov 0  }
   0xd   :  { %s1737_s27 = smov 0   ;;  %s1739_s4 = smov 0  }
   0xe LB: > { %2251 = sst [smem:[#allocation19_spill]] %s1635_s25  ;;  %s43_s28 = sadd.s32 1, %s1643_s27  ;;  %s1647_s4 = sphi %s1739_s4, %s31_s4   ;;  %s1643_s27 = sphi %s1737_s27, %s2283_s27   ;;  %s1639_s26 = sphi %s1735_s26, %s2282_s26   ;;  %s1635_s25 = sphi %s1733_s25, %s2278_s25   ;;  %s1631_s24 = sphi %s1731_s24, %s2281_s24   ;;  %s1627_s23 = sphi %s1729_s23, %s2280_s23  }
   0xf   : > { %2252 = sst [smem:[#allocation20_spill]] %s1647_s4  ;;  %s52_s29 = sadd.s32 1, %s1635_s25 }
  0x10   : > { %p45_p0 = scmp.ge.s32.totalorder %s43_s28, 2  ;;  %p2236_p1 = scmp.ne.s32.totalorder %s1635_s25, %s1631_s24 }
  0x11   : > { %p60_p2 = scmp.eq.s32.totalorder %s1647_s4, 0  ;;  %p1233_p5 = scmp.lt.s32.totalorder %s1647_s4, 2 }
  0x12   : > { %s2285_s28 = smov (%p45_p0, %s43_s28), 0  ;;  %s1774_s7 = sand.u32 1, %s1635_s25  }
  0x13   : > { %2253 = sst [smem:[#allocation21_spill]] %s2285_s28  ;;  %p61_p4 = por %p60_p2, %p2236_p1 }
  0x14   : > { %s47_s30 = ssub.s32 %s1643_s27, %s2285_s28  ;;  %s270_s9 = sand.u32 1, %s1647_s4  }
  0x15   : > { %p50_p6 = scmp.eq.s32.totalorder %s47_s30, 0  ;;  %p1776_p7 = pnand %p1233_p5, %p61_p4 }
  0x16   : > { %s1139_s10 = sshll.u32 %s1774_s7, 5  ;;  %s1189_s12 = sshll.u32 %s1643_s27, 9 }
  0x17   : > { %s2254_s8 = scalar_select %p1776_p7, 1, 0 }
  0x18   : > { %s1783_s11 = scalar_select %p50_p6, %s1635_s25, %s52_s29  }
  0x19   : > { %s2256_s1 = sld [smem:[#allocation23_spill]]  ;;  %s274_s16 = scalar_lea.vmem [#allocation7], %s1139_s10 }
  0x1a   : > { %2255 = sst [smem:[#allocation22_spill]] %s1783_s11  ;;  %s281_s17 = sshll.u32 %s274_s16, 4  ;;  %s1791_s17 = int_to_ptr.vmem [resolvable:$true] %s281_s17 }
  0x1b   : > { %s1793_s18 = scalar_lea.sflag [#allocation8], %s270_s9  ;;  %p1799_p9 = pneg %p1776_p7 }
  0x1f   : > { %s1789_s15 = scalar_lea.hbm %s2256_s1, %s1189_s12  ;;  %s1427_s29 = scalar_lea.hbm %s2256_s1, 1024 }
  0x20   : > { %s1422_s19 = scalar_lea.hbm %s1789_s15, 512  ;;  %p1428_p12 = scmp.lt.u32.totalorder %s1789_s15, %s2256_s1 }
  0x21   : > { %p1423_p8 = scmp.ne.s32.totalorder %s1789_s15, %s1422_s19  ;;  %p1429_p13 = scmp.lt.u32.totalorder %s1427_s29, %s1422_s19 }
  0x22   : > { %p1431_p2 = scmp.lt.u32.totalorder %s1422_s19, %s1789_s15 }
  0x23   : > { %p1425_p10 = pnand %p1799_p9, %p1423_p8  ;;  %p1430_p0 = por %p1429_p13, %p1428_p12 }
  0x25   : > { %p1426_p11 = pneg %p1425_p10  ;;  %p1432_p4 = por %p1431_p2, %p1430_p0 }
  0x27   : > { %p1433_p5 = pnand %p1432_p4, %p1426_p11 }
  0x29   : > { %1436 = shalt.err (!%p1433_p5)
}
  0x2a   : > { %s1437_s9 = scalar_lea.vmem %s1791_s17, 512  ;;  %s1649_s12 = smov [#allocation7]  }
  0x2b   : > { %p1438_p6 = scmp.ne.s32.totalorder %s1791_s17, %s1437_s9  ;;  %s1442_s13 = sshll.u32 %s1649_s12, 4  ;;  %s1443_s13 = int_to_ptr.vmem [resolvable:$false] %s1442_s13 }
  0x2c   : > { %s1444_s14 = scalar_lea.vmem %s1443_s13, 1024  ;;  %p1445_p3 = scmp.lt.s32.totalorder %s1791_s17, %s1443_s13 }
  0x2d   : > { %p1440_p8 = pnand %p1438_p6, %p1799_p9  ;;  %p1446_p1 = scmp.lt.s32.totalorder %s1444_s14, %s1437_s9 }
  0x2f   : > { %p1441_p10 = pneg %p1440_p8  ;;  %p1447_p12 = por %p1446_p1, %p1445_p3 }
  0x31   : > { %p1448_p13 = pnand %p1447_p12, %p1441_p10 }
  0x33   : > { %1451 = shalt.err (!%p1448_p13)
}
  0x34   : > { %s1650_s16 = smov 128   ;;  %s1651_s19 = smov 8  }
  0x35   : > { %1221 = dma.hbm_to_vmem [thread:$0]  (!%p1776_p7), %s1789_s15, 512, %s1791_s17, %s1793_s18, %s1650_s16, %s1650_s16, %s1651_s19  }
  0x36   : > { %s1824_s21 = sadd.s32 4294967295, %s1647_s4   ;;  %s1133_s22 = sadd.s32 4294967294, %s1647_s4  }
  0x37   : > { %p65_p1 = scmp.ne.s32.totalorder %s1631_s24, %s1627_s23  ;;  %p2240_p3 = scmp.eq.s32.totalorder %s1824_s21, 0 }
  0x38   : > { %p185_p11 = scmp.eq.s32.totalorder %s1824_s21, 1  ;;  %p191_p0 = scmp.eq.s32.totalorder %s1133_s22, 1 }
  0x39   : > { %p1134_p2 = scmp.ge.s32.totalorder %s1647_s4, 1  ;;  %p1834_p4 = por %p2240_p3, %p65_p1 }
  0x3a   : > { %p2259_p5 = scmp.ne.s32.totalorder %s1635_s25, %s1631_s24  ;;  %p1845_p8 = por %p191_p0, %p65_p1 }
  0x3b   : > { %s2258_s29 = scalar_select %p1834_p4, 1, 0 }
  0x3c   : > { %p1841_p6 = por %p185_p11, %p2259_p5  ;;  %p226_p10 = scmp.lt.s32.totalorder %s1647_s4, 3 }
  0x3d   : > { %s2261_s17 = scalar_select %p1845_p8, 1, 0 }
  0x3e   : > { %s2260_s15 = scalar_select %p1841_p6, 1, 0 }
  0x3f   : > { %p1850_p12 = pnand %p1134_p2, %p226_p10  ;;  %s2243_s10 = sshll.u32 %s1774_s7, 3 }
  0x40   : > { %s2238_s9 = sshll.u32 %s1643_s27, 7  ;;  %s255_s16 = scalar_lea.vmem [#allocation3], %s2243_s10 }
  0x41   : > { %s2262_s30 = scalar_select %p1850_p12, 1, 0 }
  0x42   : > { %p1211_p13 = pneg %p1850_p12  ;;  %s1863_s14 = scalar_lea.hbm %s2229_s0, %s2238_s9 }
  0x43   : > { %s263_s19 = sshll.u32 %s255_s16, 4  ;;  %s252_s1 = scalar_lea.sflag [#allocation4], %s1774_s7  ;;  %s264_s19 = int_to_ptr.vmem [resolvable:$true] %s263_s19 }
  0x44   : > { %p1869_p1 = pnand %p1211_p13, %p2240_p3  ;;  %s1452_s28 = scalar_lea.hbm %s1863_s14, 128 }
  0x45   : > { %p1453_p11 = scmp.ne.s32.totalorder %s1863_s14, %s1452_s28  ;;  %s1457_s9 = scalar_lea.hbm %s2229_s0, 256 }
  0x46   : > { %s2263_s22 = scalar_select %p1869_p1, 1, 0 }
  0x47   : > { %p1455_p0 = pnand %p1453_p11, %p1799_p9  ;;  %p1458_p5 = scmp.lt.u32.totalorder %s1863_s14, %s2229_s0 }
  0x48   : > { %p1459_p10 = scmp.lt.u32.totalorder %s1457_s9, %s1452_s28  ;;  %p1461_p3 = scmp.lt.u32.totalorder %s1452_s28, %s1863_s14 }
  0x49   : > { %p1456_p2 = pneg %p1455_p0 }
  0x4a   : > { %p1460_p13 = por %p1459_p10, %p1458_p5 }
  0x4c   : > { %p1462_p8 = por %p1461_p3, %p1460_p13 }
  0x4e   : > { %p1463_p6 = pnand %p1462_p8, %p1456_p2 }
  0x50   : > { %1466 = shalt.err (!%p1463_p6)
}
  0x51   : > { %s1467_s16 = scalar_lea.vmem %s264_s19, 128  ;;  %s1652_s10 = smov [#allocation3]  }
  0x52   : > { %p1468_p4 = scmp.ne.s32.totalorder %s264_s19, %s1467_s16  ;;  %s1472_s4 = sshll.u32 %s1652_s10, 4  ;;  %s1473_s4 = int_to_ptr.vmem [resolvable:$false] %s1472_s4 }
  0x53   : > { %s1474_s12 = scalar_lea.vmem %s1473_s4, 256  ;;  %p1475_p12 = scmp.lt.s32.totalorder %s264_s19, %s1473_s4 }
  0x54   : > { %p1470_p11 = pnand %p1468_p4, %p1799_p9  ;;  %p1476_p1 = scmp.lt.s32.totalorder %s1474_s12, %s1467_s16 }
  0x56   : > { %p1471_p0 = pneg %p1470_p11  ;;  %p1477_p7 = por %p1476_p1, %p1475_p12 }
  0x58   : > { %p1478_p5 = pnand %p1477_p7, %p1471_p0 }
  0x5a   : > { %1481 = shalt.err (!%p1478_p5)
}
  0x5b   : > { %p2264_p10 = scmp.ne.s32.totalorder %s2254_s8, 0  ;;  %s1482_s11 = scalar_lea.hbm %s2232_s3, 16 }
  0x5c   : > { %p1483_p3 = scmp.ne.s32.totalorder %s2232_s3, %s1482_s11  ;;  %p2265_p4 = scmp.ne.s32.totalorder %s2263_s22, 0 }
  0x5d   : > { %1218 = dma.hbm_to_vmem [thread:$0]  (!%p2264_p10), %s1863_s14, 128, %s264_s19, %s252_s1  }
  0x5e   : > { %p1484_p6 = pneg %p2265_p4  ;;  %p1489_p7 = scmp.lt.u32.totalorder %s1482_s11, %s2232_s3 }
  0x60   : > { %p1485_p8 = pnand %p1484_p6, %p1483_p3 }
  0x62   : > { %p1486_p2 = pneg %p1485_p8 }
  0x64   : > { %p1491_p12 = pnand %p1489_p7, %p1486_p2 }
  0x66   : > { %1494 = shalt.err (!%p1491_p12)
}
  0x67   : > { %s1653_s16 = smov [#allocation10]   ;;  %s2266_s19 = sshll.u32 %s1643_s27, 7 }
  0x68   : > { %1214 = dma.hbm_to_smem (!%p2265_p4), %s2232_s3, 16, %s1653_s16, [#allocation6]  }
  0x69   : > { %s1912_s28 = scalar_lea.hbm %s2231_s2, %s2266_s19  ;;  %s2267_s9 = sshll.u32 %s1774_s7, 3 }
  0x6a   : > { %s295_s11 = scalar_lea.vmem [#allocation9], %s2267_s9  ;;  %s1495_s13 = scalar_lea.hbm %s1912_s28, 128 }
  0x6b   : > { %s302_s22 = sshll.u32 %s295_s11, 4  ;;  %p1496_p1 = scmp.ne.s32.totalorder %s1912_s28, %s1495_s13  ;;  %s303_s22 = int_to_ptr.vmem [resolvable:$true] %s302_s22 }
  0x6c   : > { %s1500_s16 = scalar_lea.hbm %s2231_s2, 256  ;;  %p1501_p0 = scmp.lt.u32.totalorder %s1912_s28, %s2231_s2 }
  0x6d   : > { %p1498_p13 = pnand %p1496_p1, %p1799_p9  ;;  %p1502_p5 = scmp.lt.u32.totalorder %s1500_s16, %s1495_s13 }
  0x6e   : > { %p1504_p4 = scmp.lt.u32.totalorder %s1495_s13, %s1912_s28 }
  0x6f   : > { %p1499_p11 = pneg %p1498_p13  ;;  %p1503_p3 = por %p1502_p5, %p1501_p0 }
  0x71   : > { %p1505_p6 = por %p1504_p4, %p1503_p3 }
  0x73   : > { %p1506_p8 = pnand %p1505_p6, %p1499_p11 }
  0x75   : > { %1509 = shalt.err (!%p1506_p8)
}
  0x76   : > { %s1510_s7 = scalar_lea.vmem %s303_s22, 128  ;;  %s1654_s19 = smov [#allocation9]  }
  0x77   : > { %p1511_p2 = scmp.ne.s32.totalorder %s303_s22, %s1510_s7  ;;  %s1515_s12 = sshll.u32 %s1654_s19, 4  ;;  %s1516_s12 = int_to_ptr.vmem [resolvable:$false] %s1515_s12 }
  0x78   : > { %s1517_s25 = scalar_lea.vmem %s1516_s12, 256  ;;  %p1518_p1 = scmp.lt.s32.totalorder %s303_s22, %s1516_s12 }
  0x79   : > { %p1513_p7 = pnand %p1511_p2, %p1799_p9  ;;  %p1519_p13 = scmp.lt.s32.totalorder %s1517_s25, %s1510_s7 }
  0x7b   : > { %p1514_p12 = pneg %p1513_p7  ;;  %p1520_p10 = por %p1519_p13, %p1518_p1 }
  0x7d   : > { %p1521_p0 = pnand %p1520_p10, %p1514_p12 }
  0x7f   : > { %1524 = shalt.err (!%p1521_p0)
}
  0x80   : > { %p2268_p5 = scmp.ne.s32.totalorder %s2254_s8, 0  ;;  %p2269_p11 = scmp.ne.s32.totalorder %s2262_s30, 0 }
  0x81   : > { %s1937_s20 = sand.u32 (!%p2269_p11), 1, %s1631_s24   ;;  %p2270_p9 = scmp.ne.s32.totalorder (!%p2269_p11), %s2258_s29, 0 }
  0x82   : > { %1224 = dma.hbm_to_vmem [thread:$0]  (!%p2268_p5), %s1912_s28, 128, %s303_s22, %s1793_s18  }
  0x83   : > { %311 = sbr.rel (%p2269_p11) target bundleno = 937 (0x3a9), region = 40  ;;  %s1940_s9 = sshll.u32 (!%p2269_p11), %s1937_s20, 3 }
  0x84   : > { %s314_s11 = scalar_lea.sflag (!%p2269_p11), [#allocation4], %s1937_s20  ;;  %s317_s13 = scalar_lea.vmem (!%p2269_p11), [#allocation3], %s1940_s9 }
  0x8a   : > { %1606 = dma.done.wait (%p2270_p9), %s314_s11, 128  }
  0x8b   : > { %1608 = vsyncadd (%p2270_p9), %s314_s11, 4294967168  ;;  %s322_s8 = sand.u32 1, %s1824_s21   ;;  %s1146_s18 = sshll.u32 %s1937_s20, 5 }
  0x8c   : > { %s323_s30 = scalar_lea.sflag [#allocation8], %s322_s8  ;;  %s1950_s28 = scalar_lea.vmem [#allocation7], %s1146_s18 }
  0x8d   : > { %1610 = dma.done.wait (%p2270_p9), %s323_s30, 640  }
  0x8e   : > { %1612 = vsyncadd (%p2270_p9), %s323_s30, 4294966656  ;;  %s335_s22 = scalar_lea.vmem [#allocation9], %s1940_s9  ;;  %p2271_p10 = scmp.eq.s32.totalorder %s1824_s21, 0 }
  0x90   : > { %1614 = dma.done.wait (%p2271_p10), [#allocation6], 16   ;;  %p2272_p3 = pmov %p2271_p10 }
  0x92   : > { %1616 = vsyncadd (%p2272_p3), [#allocation6], 4294967280 }
  0x93   : > { %344 = sfence }
  0x94   : > { %v1961_v0 = vld [vmem:[%s317_s13] sm:$0xff]  ;;  %v1655_v1 = vmov 2   ;;  %v1656_v2 = vmov 0   ;;  %v1657_v3 = vmov 3   ;;  %v1658_v4 = vmov 1   ;;  %v1998_v36 = vld [vmem:[%s1950_s28] sm:$0xff] }
  0x95   : > { %1323 = vset.pattern.permute.xlu1 %v1655_v1  ;;  %1321 = vset.pattern.permute.xlu0 %v1656_v2  ;;  %v1659_v5 = vmov 4   ;;  %v1660_v6 = vmov 5   ;;  %v1661_v7 = vmov 6   ;;  %v1662_v8 = vmov 8   ;;  %s2018_s21 = sld [smem:[#allocation10]]  ;;  %s2020_s29 = sld [smem:[#allocation2]] }
  0x96   : > { %421 = vperm.xlu1 %1323, %v1961_v0   ;;  %393 = vperm.xlu0 %1321, %v1961_v0   ;;  %v1663_v9 = vmov 7   ;;  %v1664_v10 = vmov 11   ;;  %v1665_v11 = vmov 9   ;;  %v1666_v12 = vmov 14   ;;  %s2028_s4 = sld [smem:[#allocation10 + $0x1]]  ;;  %s2030_s10 = sld [smem:[#allocation10 + $0x2]] }
  0x97   : > { %v1667_v13 = vmov 10   ;;  %v1668_v14 = vmov 17   ;;  %v1669_v15 = vmov 12   ;;  %v1670_v16 = vmov 20   ;;  %v2033_v61 = vld [vmem:[%s1950_s28 + $0x8] sm:$0xff]  ;;  %s2038_s16 = sld [smem:[#allocation10 + $0x3]] }
  0x98   : > { %v1671_v17 = vmov 13   ;;  %v1672_v18 = vmov 23   ;;  %v1673_v19 = vmov 15   ;;  %v1674_v20 = vmov 26   ;;  %s2040_s1 = sld [smem:[#allocation10 + $0x4]]  ;;  %s2047_s14 = sld [smem:[#allocation10 + $0x5]] }
  0x99   : > { %v1675_v21 = vmov 16   ;;  %v1676_v22 = vmov 29   ;;  %v1677_v23 = vmov 18   ;;  %v1678_v24 = vmov 31   ;;  %s2053_s7 = sld [smem:[#allocation10 + $0x6]]  ;;  %s2060_s19 = sld [smem:[#allocation10 + $0x7]] }
  0x9a   : > { %1324 = vset.pattern.permute.xlu1 %v1657_v3  ;;  %1322 = vset.pattern.permute.xlu0 %v1658_v4  ;;  %v1679_v25 = vmov 19   ;;  %v1680_v26 = vmov 21   ;;  %v1681_v27 = vmov 22   ;;  %v1682_v28 = vmov 24   ;;  %s2064_s12 = sld [smem:[#allocation10 + $0x8]]  ;;  %s1159_s25 = sld [smem:[#allocation10 + $0x9]] }
  0x9b   : > { %435 = vperm.xlu1 %1324, %v1961_v0   ;;  %407 = vperm.xlu0 %1322, %v1961_v0   ;;  %v1683_v29 = vmov 25   ;;  %v1684_v30 = vmov 27   ;;  %v1685_v31 = vmov 28   ;;  %v1686_v32 = vmov 30   ;;  %s2073_s11 = sld [smem:[#allocation10 + $0xa]]  ;;  %s2077_s13 = sld [smem:[#allocation10 + $0xb]] }
  0x9c   : > { %v396_v33 = vlaneseq  ;;  %v403_v62 = vstv %s2018_s21  ;;  %v390_v3 = vstv %s2020_s29  ;;  %s1162_s8 = sld [smem:[#allocation10 + $0xc]]  ;;  %s2085_s18 = sld [smem:[#allocation10 + $0xd]]  ;;  %vm840_vm0 = vcmask 64512  }
  0x9d   : > { %s2092_s30 = sld [smem:[#allocation10 + $0xe]]  ;;  %s1165_s21 = sld [smem:[#allocation10 + $0xf]]  ;;  %vm1688_vm1 = vmmov 0  }
  0x9e   : > { %v397_v34 = vshrl.u32 %v396_v33, 7  ;;  %s1166_s29 = sld [smem:[#allocation10 + $0x10]]  ;;  %p2273_p6 = scmp.ne.s32.totalorder %s2260_s15, 0 }
  0x9f   : > { %1325 = vset.pattern.permute.xlu1 %v1659_v5  ;;  %1326 = vset.pattern.permute.xlu0 %v1660_v6 }
  0xa0   : > { %449 = vperm.xlu1 %1325, %v1961_v0   ;;  %463 = vperm.xlu0 %1326, %v1961_v0   ;;  %v1995_v35 = vsub.s32 0, %v397_v34  ;;  %v2000_v37 = vsub.s32 2, %v397_v34  ;;  %v2004_v39 = vsub.s32 1, %v397_v34  ;;  %v2006_v40 = vsub.s32 3, %v397_v34 }
  0xa1   : > { %v2014_v47 = vsub.s32 4, %v397_v34  ;;  %v2016_v48 = vsub.s32 5, %v397_v34  ;;  %v2026_v56 = vsub.s32 6, %v397_v34 }
  0xa2   : > { %v399_v38 = vrot.slane %v1998_v36, %v1995_v35  ;;  %v427_v41 = vrot.slane %v1998_v36, %v2000_v37  ;;  %v413_v45 = vrot.slane %v1998_v36, %v2004_v39  ;;  %v441_v46 = vrot.slane %v1998_v36, %v2006_v40 }
  0xa3   : > { %v455_v54 = vrot.slane %v1998_v36, %v2014_v47  ;;  %v469_v55 = vrot.slane %v1998_v36, %v2016_v48  ;;  %v483_v63 = vrot.slane %v1998_v36, %v2026_v56  ;;  %v511_v2 = vrot.slane %v2033_v61, %v1995_v35 }
  0xa4   : > { %1327 = vset.pattern.permute.xlu1 %v1661_v7  ;;  %1329 = vset.pattern.permute.xlu0 %v1662_v8  ;;  %v417_v8 = vstv %s2028_s4  ;;  %s2102_s4 = sld [smem:[#allocation10 + $0x11]] }
  0xa5   : > { %477 = vperm.xlu1 %1327, %v1961_v0   ;;  %505 = vperm.xlu0 %1329, %v1961_v0  }
  0xa9   : > { %1328 = vset.pattern.permute.xlu1 %v1663_v9  ;;  %1332 = vset.pattern.permute.xlu0 %v1664_v10 }
  0xaa   : > { %491 = vperm.xlu1 %1328, %v1961_v0   ;;  %547 = vperm.xlu0 %1332, %v1961_v0  }
  0xae   : > { %1330 = vset.pattern.permute.xlu1 %v1665_v11  ;;  %1335 = vset.pattern.permute.xlu0 %v1666_v12 }
  0xaf   : > { %519 = vperm.xlu1 %1330, %v1961_v0   ;;  %589 = vperm.xlu0 %1335, %v1961_v0  }
  0xb3   : > { %1331 = vset.pattern.permute.xlu1 %v1667_v13  ;;  %1338 = vset.pattern.permute.xlu0 %v1668_v14  ;;  %v431_v14 = vstv %s2030_s10  ;;  %s1168_s10 = sld [smem:[#allocation10 + $0x12]] }
  0xb4   : > { %533 = vperm.xlu1 %1331, %v1961_v0   ;;  %631 = vperm.xlu0 %1338, %v1961_v0  }
  0xb8   : > { %1333 = vset.pattern.permute.xlu1 %v1669_v15  ;;  %1341 = vset.pattern.permute.xlu0 %v1670_v16 }
  0xb9   : > { %561 = vperm.xlu1 %1333, %v1961_v0   ;;  %673 = vperm.xlu0 %1341, %v1961_v0  }
  0xbd   : > { %1334 = vset.pattern.permute.xlu1 %v1671_v17  ;;  %1344 = vset.pattern.permute.xlu0 %v1672_v18  ;;  %v445_v18 = vstv %s2038_s16  ;;  %s2109_s16 = sld [smem:[#allocation10 + $0x13]] }
  0xbe   : > { %575 = vperm.xlu1 %1334, %v1961_v0   ;;  %715 = vperm.xlu0 %1344, %v1961_v0  }
  0xc2   : > { %1336 = vset.pattern.permute.xlu1 %v1673_v19  ;;  %1347 = vset.pattern.permute.xlu0 %v1674_v20  ;;  %v459_v19 = vstv %s2040_s1  ;;  %s2113_s1 = sld [smem:[#allocation10 + $0x14]] }
  0xc3   : > { %603 = vperm.xlu1 %1336, %v1961_v0   ;;  %757 = vperm.xlu0 %1347, %v1961_v0  }
  0xc7   : > { %1337 = vset.pattern.permute.xlu1 %v1675_v21  ;;  %1350 = vset.pattern.permute.xlu0 %v1676_v22 }
  0xc8   : > { %617 = vperm.xlu1 %1337, %v1961_v0   ;;  %799 = vperm.xlu0 %1350, %v1961_v0  }
  0xcc   : > { %1339 = vset.pattern.permute.xlu1 %v1677_v23  ;;  %1353 = vset.pattern.permute.xlu0 %v1678_v24  ;;  %v525_v23 = vrot.slane %v2033_v61, %v2004_v39 }
  0xcd   : > { %645 = vperm.xlu1 %1339, %v1961_v0  }
  0xd1   : > { %1340 = vset.pattern.permute.xlu1 %v1679_v25  ;;  %v473_v25 = vstv %s2047_s14  ;;  %s1171_s14 = sld [smem:[#allocation10 + $0x15]] }
  0xd2   : > { %659 = vperm.xlu1 %1340, %v1961_v0  }
  0xd6   : > { %1342 = vset.pattern.permute.xlu1 %v1680_v26 }
  0xd7   : > { %687 = vperm.xlu1 %1342, %v1961_v0  }
  0xdb   : > { %1343 = vset.pattern.permute.xlu1 %v1681_v27 }
  0xdc   : > { %701 = vperm.xlu1 %1343, %v1961_v0  }
  0xe0   : > { %1345 = vset.pattern.permute.xlu1 %v1682_v28 }
  0xe1   : > { %729 = vperm.xlu1 %1345, %v1961_v0  }
  0xe5   : > { %1346 = vset.pattern.permute.xlu1 %v1683_v29 }
  0xe6   : > { %743 = vperm.xlu1 %1346, %v1961_v0  }
  0xea   : > { %1348 = vset.pattern.permute.xlu1 %v1684_v30  ;;  %v553_v30 = vrot.slane %v2033_v61, %v2006_v40 }
  0xeb   : > { %771 = vperm.xlu1 %1348, %v1961_v0  }
  0xef   : > { %1349 = vset.pattern.permute.xlu1 %v1685_v31 }
  0xf0   : > { %785 = vperm.xlu1 %1349, %v1961_v0  }
  0xf4   : > { %1351 = vset.pattern.permute.xlu1 %v1686_v32 }
  0xf5   : > { %813 = vperm.xlu1 %1351, %v1961_v0  }
  0xf9   : > { %1352 = vset.pattern.permute.xlu1 %v1678_v24 }
  0xfa   : > { %827 = vperm.xlu1 %1352, %v1961_v0   ;;  %v2042_v0 = vsub.s32 7, %v397_v34 }
  0xfc   : > { %v497_v9 = vrot.slane %v1998_v36, %v2042_v0 }
 0x115   : > { %v422_v42 = vpop.permute.xlu1 %421  ;;  %v394_v43 = vpop.permute.xlu0 %393 }
 0x116   : > { %v400_v44 = vadd.f32 %v399_v38, %v394_v43  ;;  %v428_v49 = vadd.f32 %v427_v41, %v422_v42  ;;  %v487_v38 = vstv %s2053_s7  ;;  %v539_v41 = vrot.slane %v2033_v61, %v2000_v37  ;;  %s1172_s7 = sld [smem:[#allocation10 + $0x16]] }
 0x118   : > { %1354 = vtanh.f32 %v400_v44 }
 0x119   : > { %1356 = vtanh.f32 %v428_v49 }
 0x11a   : > { %v436_v50 = vpop.permute.xlu1 %435  ;;  %v408_v51 = vpop.permute.xlu0 %407 }
 0x11b   : > { %v414_v52 = vadd.f32 %v413_v45, %v408_v51  ;;  %v442_v53 = vadd.f32 %v441_v46, %v436_v50  ;;  %v501_v50 = vstv %s2060_s19  ;;  %s1174_s19 = sld [smem:[#allocation10 + $0x18]] }
 0x11d   : > { %1358 = vtanh.f32 %v414_v52 }
 0x11e   : > { %1360 = vtanh.f32 %v442_v53  ;;  %v567_v53 = vrot.slane %v2033_v61, %v2014_v47 }
 0x11f   : > { %v450_v57 = vpop.permute.xlu1 %449  ;;  %v464_v58 = vpop.permute.xlu0 %463 }
 0x120   : > { %v456_v59 = vadd.f32 %v455_v54, %v450_v57  ;;  %v470_v60 = vadd.f32 %v469_v55, %v464_v58  ;;  %v515_v55 = vstv %s2064_s12  ;;  %s1175_s12 = sld [smem:[#allocation10 + $0x19]] }
 0x122   : > { %1362 = vtanh.f32 %v456_v59  ;;  %v1355_v1 = vpop.eup %1354  ;;  %v595_v59 = vrot.slane %v2033_v61, %v2026_v56 }
 0x123   : > { %1364 = vtanh.f32 %v470_v60  ;;  %v404_v4 = vmul.f32 %v1355_v1, %v403_v62  ;;  %v1357_v10 = vpop.eup %1356 }
 0x124   : > { %v478_v5 = vpop.permute.xlu1 %477  ;;  %v506_v6 = vpop.permute.xlu0 %505  ;;  %v432_v21 = vmul.f32 %v1357_v10, %v431_v14  ;;  %v543_v10 = vstv %s2073_s11  ;;  %s1177_s11 = sld [smem:[#allocation10 + $0x1b]] }
 0x125   : > { %v484_v7 = vadd.f32 %v483_v63, %v478_v5  ;;  %v405_v11 = vadd.f32 %v404_v4, %v390_v3  ;;  %v512_v12 = vadd.f32 %v511_v2, %v506_v6  ;;  %v529_v3 = vstv %s1159_s25  ;;  %s1176_s25 = sld [smem:[#allocation10 + $0x1a]] }
 0x126   : > { %v581_v4 = vrot.slane %v2033_v61, %v2016_v48 }
 0x127   : > { %1366 = vtanh.f32 %v484_v7  ;;  %v1359_v13 = vpop.eup %1358 }
 0x128   : > { %v418_v15 = vmul.f32 %v1359_v13, %v417_v8  ;;  %v1361_v17 = vpop.eup %1360  ;;  %1368 = vtanh.f32 %v512_v12  ;;  %v609_v13 = vrot.slane %v2033_v61, %v2042_v0 }
 0x129   : > { %v492_v16 = vpop.permute.xlu1 %491  ;;  %v446_v27 = vmul.f32 %v1361_v17, %v445_v18  ;;  %v548_v32 = vpop.permute.xlu0 %547 }
 0x12a   : > { %v498_v20 = vadd.f32 %v497_v9, %v492_v16  ;;  %v419_v22 = vadd.f32 %v418_v15, %v405_v11  ;;  %v554_v44 = vadd.f32 %v553_v30, %v548_v32  ;;  %v557_v15 = vstv %s2077_s13  ;;  %v2088_v16 = vld [vmem:[%s1950_s28 + $0x10] sm:$0xff]  ;;  %s1178_s13 = sld [smem:[#allocation10 + $0x1c]] }
 0x12c   : > { %v1363_v24 = vpop.eup %1362  ;;  %1370 = vtanh.f32 %v498_v20  ;;  %v433_v28 = vadd.f32 %v432_v21, %v419_v22 }
 0x12d   : > { %v1365_v26 = vpop.eup %1364  ;;  %v460_v29 = vmul.f32 %v1363_v24, %v459_v19  ;;  %v637_v19 = vrot.slane %v2088_v16, %v2004_v39  ;;  %v571_v24 = vstv %s1162_s8  ;;  %s1179_s8 = sld [smem:[#allocation10 + $0x1d]] }
 0x12e   : > { %v520_v31 = vpop.permute.xlu1 %519  ;;  %v447_v33 = vadd.f32 %v446_v27, %v433_v28  ;;  %v474_v34 = vmul.f32 %v1365_v26, %v473_v25  ;;  %v590_v62 = vpop.permute.xlu0 %589  ;;  %v623_v25 = vrot.slane %v2088_v16, %v1995_v35 }
 0x12f   : > { %v526_v36 = vadd.f32 %v525_v23, %v520_v31  ;;  %v596_v6 = vadd.f32 %v595_v59, %v590_v62  ;;  %v585_v31 = vstv %s2085_s18  ;;  %v627_v59 = vstv %s1166_s29  ;;  %s1180_s18 = sld [smem:[#allocation10 + $0x1e]]  ;;  %s1185_s29 = sshll.u32 %s1639_s26, 7 }
 0x130   : > { %v461_v43 = vadd.f32 %v460_v29, %v447_v33 }
 0x131   : > { %v1367_v42 = vpop.eup %1366  ;;  %1372 = vtanh.f32 %v526_v36 }
 0x132   : > { %v475_v45 = vadd.f32 %v474_v34, %v461_v43  ;;  %v488_v46 = vmul.f32 %v1367_v42, %v487_v38  ;;  %v1369_v52 = vpop.eup %1368  ;;  %1374 = vtanh.f32 %v554_v44  ;;  %v651_v34 = vrot.slane %v2088_v16, %v2000_v37 }
 0x133   : > { %v534_v49 = vpop.permute.xlu1 %533  ;;  %v516_v1 = vmul.f32 %v1369_v52, %v515_v55  ;;  %v632_v21 = vpop.permute.xlu0 %631  ;;  %v599_v38 = vstv %s2092_s30  ;;  %v679_v43 = vrot.slane %v2088_v16, %v2014_v47  ;;  %v665_v52 = vrot.slane %v2088_v16, %v2006_v40  ;;  %s1181_s30 = sld [smem:[#allocation10 + $0x1f]] }
 0x134   : > { %v540_v51 = vadd.f32 %v539_v41, %v534_v49  ;;  %v489_v57 = vadd.f32 %v488_v46, %v475_v45  ;;  %v638_v27 = vadd.f32 %v637_v19, %v632_v21 }
 0x136   : > { %v1371_v54 = vpop.eup %1370  ;;  %1376 = vtanh.f32 %v540_v51  ;;  %v613_v51 = vstv %s1165_s21  ;;  %s383_s21 = scalar_lea.vmem [#allocation12], %s1940_s9 }
 0x137   : > { %v502_v58 = vmul.f32 %v1371_v54, %v501_v50 }
 0x138   : > { %v562_v60 = vpop.permute.xlu1 %561  ;;  %v674_v45 = vpop.permute.xlu0 %673 }
 0x139   : > { %v503_v63 = vadd.f32 %v502_v58, %v489_v57  ;;  %v568_v2 = vadd.f32 %v567_v53, %v562_v60  ;;  %v680_v54 = vadd.f32 %v679_v43, %v674_v45 }
 0x13b   : > { %v1373_v5 = vpop.eup %1372  ;;  %1378 = vtanh.f32 %v568_v2  ;;  %v517_v7 = vadd.f32 %v516_v1, %v503_v63  ;;  %v693_v63 = vrot.slane %v2088_v16, %v2016_v48  ;;  %v641_v2 = vstv %s2102_s4 }
 0x13c   : > { %v530_v8 = vmul.f32 %v1373_v5, %v529_v3  ;;  %v1375_v12 = vpop.eup %1374  ;;  %1380 = vtanh.f32 %v596_v6  ;;  %v721_v5 = vrot.slane %v2088_v16, %v2042_v0 }
 0x13d   : > { %v576_v9 = vpop.permute.xlu1 %575  ;;  %v558_v23 = vmul.f32 %v1375_v12, %v557_v15  ;;  %v707_v12 = vrot.slane %v2088_v16, %v2026_v56  ;;  %v2118_v15 = vld [vmem:[%s1950_s28 + $0x18] sm:$0xff]  ;;  %s2126_s28 = sld [smem:[#allocation10 + $0x17]] }
 0x13e   : > { %v582_v11 = vadd.f32 %v581_v4, %v576_v9  ;;  %v531_v17 = vadd.f32 %v530_v8, %v517_v7  ;;  %v716_v7 = vpop.permute.xlu0 %715 }
 0x140   : > { %v1377_v14 = vpop.eup %1376  ;;  %1382 = vtanh.f32 %v582_v11  ;;  %v655_v11 = vstv %s1168_s10  ;;  %s2154_s10 = scalar_lea.hbm %s2235_s6, %s1185_s29 }
 0x141   : > { %v544_v18 = vmul.f32 %v1377_v14, %v543_v10  ;;  %v722_v14 = vadd.f32 %v721_v5, %v716_v7  ;;  %v767_v5 = vstv %s1176_s25 }
 0x142   : > { %v604_v20 = vpop.permute.xlu1 %603 }
 0x143   : > { %v545_v22 = vadd.f32 %v544_v18, %v531_v17  ;;  %v610_v61 = vadd.f32 %v609_v13, %v604_v20  ;;  %v669_v20 = vstv %s2109_s16  ;;  %s964_s16 = sshll.u32 %s383_s21, 4  ;;  %s965_s16 = int_to_ptr.vmem [resolvable:$true] %s964_s16 }
 0x145   : > { %v1379_v26 = vpop.eup %1378  ;;  %1384 = vtanh.f32 %v610_v61  ;;  %v559_v28 = vadd.f32 %v558_v23, %v545_v22  ;;  %v735_v23 = vrot.slane %v2118_v15, %v1995_v35  ;;  %v749_v35 = vrot.slane %v2118_v15, %v2004_v39 }
 0x146   : > { %v572_v29 = vmul.f32 %v1379_v26, %v571_v24  ;;  %v1381_v33 = vpop.eup %1380  ;;  %1386 = vtanh.f32 %v638_v27  ;;  %v683_v24 = vstv %s2113_s1  ;;  %v763_v26 = vrot.slane %v2118_v15, %v2000_v37  ;;  %s936_s1 = scalar_lea.sflag [#allocation13], %s1937_s20 }
 0x147   : > { %v618_v30 = vpop.permute.xlu1 %617  ;;  %v600_v49 = vmul.f32 %v1381_v33, %v599_v38  ;;  %v711_v37 = vstv %s1172_s7  ;;  %s1689_s7 = smov [#allocation12]  }
 0x148   : > { %v624_v32 = vadd.f32 %v623_v25, %v618_v30  ;;  %v573_v41 = vadd.f32 %v572_v29, %v559_v28  ;;  %v758_v28 = vpop.permute.xlu0 %757 }
 0x14a   : > { %v1383_v36 = vpop.eup %1382  ;;  %1388 = vtanh.f32 %v624_v32  ;;  %v697_v32 = vstv %s1171_s14  ;;  %s1525_s14 = scalar_lea.vmem %s965_s16, 128 }
 0x14b   : > { %v586_v42 = vmul.f32 %v1383_v36, %v585_v31  ;;  %p1526_p4 = scmp.ne.s32.totalorder %s965_s16, %s1525_s14 }
 0x14c   : > { %v646_v44 = vpop.permute.xlu1 %645 }
 0x14d   : > { %v587_v46 = vadd.f32 %v586_v42, %v573_v41  ;;  %v652_v50 = vadd.f32 %v651_v34, %v646_v44  ;;  %v764_v34 = vadd.f32 %v763_v26, %v758_v28  ;;  %v777_v44 = vrot.slane %v2118_v15, %v2006_v40  ;;  %p1527_p8 = pnand %p1526_p4, %p2273_p6 }
 0x14f   : > { %v1385_v53 = vpop.eup %1384  ;;  %1390 = vtanh.f32 %v652_v50  ;;  %v601_v55 = vadd.f32 %v600_v49, %v587_v46  ;;  %v725_v46 = vstv %s2126_s28  ;;  %v805_v50 = vrot.slane %v2118_v15, %v2016_v48  ;;  %p1528_p2 = pneg %p1527_p8  ;;  %s1529_s28 = sshll.u32 %s1689_s7, 4  ;;  %s1530_s28 = int_to_ptr.vmem [resolvable:$false] %s1529_s28 }
 0x150   : > { %v614_v57 = vmul.f32 %v1385_v53, %v613_v51  ;;  %v1387_v62 = vpop.eup %1386  ;;  %1392 = vtanh.f32 %v680_v54  ;;  %p1532_p7 = scmp.lt.s32.totalorder %s965_s16, %s1530_s28 }
 0x151   : > { %v660_v58 = vpop.permute.xlu1 %659  ;;  %v642_v9 = vmul.f32 %v1387_v62, %v641_v2 }
 0x152   : > { %v666_v60 = vadd.f32 %v665_v52, %v660_v58  ;;  %v615_v3 = vadd.f32 %v614_v57, %v601_v55  ;;  %v800_v52 = vpop.permute.xlu0 %799  ;;  %v739_v57 = vstv %s1174_s19  ;;  %v791_v58 = vrot.slane %v2118_v15, %v2014_v47  ;;  %s1531_s19 = scalar_lea.vmem %s1530_s28, 256 }
 0x153   : > { %p1533_p12 = scmp.lt.s32.totalorder %s1531_s19, %s1525_s14 }
 0x154   : > { %v1389_v1 = vpop.eup %1388  ;;  %1394 = vtanh.f32 %v666_v60 }
 0x155   : > { %v628_v4 = vmul.f32 %v1389_v1, %v627_v59  ;;  %v806_v59 = vadd.f32 %v805_v50, %v800_v52  ;;  %v753_v1 = vstv %s1175_s12  ;;  %p1534_p1 = por %p1533_p12, %p1532_p7 }
 0x156   : > { %v688_v6 = vpop.permute.xlu1 %687 }
 0x157   : > { %v629_v8 = vadd.f32 %v628_v4, %v615_v3  ;;  %v694_v10 = vadd.f32 %v693_v63, %v688_v6  ;;  %v819_v3 = vrot.slane %v2118_v15, %v2026_v56  ;;  %p1535_p13 = pnand %p1534_p1, %p1528_p2 }
 0x159   : > { %v1391_v13 = vpop.eup %1390  ;;  %1396 = vtanh.f32 %v694_v10  ;;  %v643_v17 = vadd.f32 %v642_v9, %v629_v8 }
 0x15a   : > { %v656_v18 = vmul.f32 %v1391_v13, %v655_v11  ;;  %v1393_v22 = vpop.eup %1392  ;;  %1398 = vtanh.f32 %v722_v14  ;;  %v781_v11 = vstv %s1177_s11 }
 0x15b   : > { %v702_v19 = vpop.permute.xlu1 %701  ;;  %v684_v30 = vmul.f32 %v1393_v22, %v683_v24  ;;  %v809_v22 = vstv %s1179_s8 }
 0x15c   : > { %v708_v21 = vadd.f32 %v707_v12, %v702_v19  ;;  %v657_v16 = vadd.f32 %v656_v18, %v643_v17  ;;  %v833_v12 = vrot.slane %v2118_v15, %v2042_v0  ;;  %v795_v19 = vstv %s1178_s13 }
 0x15e   : > { %v1395_v61 = vpop.eup %1394  ;;  %1400 = vtanh.f32 %v708_v21 }
 0x15f   : > { %v670_v25 = vmul.f32 %v1395_v61, %v669_v20 }
 0x160   : > { %v730_v27 = vpop.permute.xlu1 %729 }
 0x161   : > { %v671_v29 = vadd.f32 %v670_v25, %v657_v16  ;;  %v736_v31 = vadd.f32 %v735_v23, %v730_v27  ;;  %v823_v25 = vstv %s1180_s18  ;;  %v837_v27 = vstv %s1181_s30 }
 0x163   : > { %v1397_v33 = vpop.eup %1396  ;;  %1402 = vtanh.f32 %v736_v31  ;;  %v685_v36 = vadd.f32 %v684_v30, %v671_v29 }
 0x164   : > { %v698_v38 = vmul.f32 %v1397_v33, %v697_v32  ;;  %v1399_v43 = vpop.eup %1398  ;;  %1404 = vtanh.f32 %v764_v34 }
 0x165   : > { %v744_v41 = vpop.permute.xlu1 %743  ;;  %v726_v54 = vmul.f32 %v1399_v43, %v725_v46 }
 0x166   : > { %v750_v42 = vadd.f32 %v749_v35, %v744_v41  ;;  %v699_v49 = vadd.f32 %v698_v38, %v685_v36  ;;  %v854_v41 = vld [vmem:[%s335_s22] sm:$0xff] }
 0x168   : > { %v1401_v45 = vpop.eup %1400  ;;  %1406 = vtanh.f32 %v750_v42 }
 0x169   : > { %v712_v39 = vmul.f32 %v1401_v45, %v711_v37  ;;  %v1687_v37 = vmov 0.0  }
 0x16a   : > { %v772_v51 = vpop.permute.xlu1 %771  ;;  %1192 = vmatprep.subr.mxu0 %v1687_v37  ;;  %1194 = vmatprep.mubr.msk.f32.mxu0 %vm1688_vm1, %v1687_v37 }
 0x16b   : > { %v713_v53 = vadd.f32 %v712_v39, %v699_v49  ;;  %v778_v55 = vadd.f32 %v777_v44, %v772_v51  ;;  %1193 = vmatpush3.msra.mxu0 %v854_v41 }
 0x16d   : > { %v1403_v40 = vpop.eup %1402  ;;  %1408 = vtanh.f32 %v778_v55  ;;  %v727_v60 = vadd.f32 %v726_v54, %v713_v53 }
 0x16e   : > { %v740_v62 = vmul.f32 %v1403_v40, %v739_v57  ;;  %v1405_v48 = vpop.eup %1404  ;;  %1410 = vtanh.f32 %v806_v59 }
 0x16f   : > { %v786_v63 = vpop.permute.xlu1 %785  ;;  %v768_v9 = vmul.f32 %v1405_v48, %v767_v5 }
 0x170   : > { %v792_v2 = vadd.f32 %v791_v58, %v786_v63  ;;  %v741_v6 = vadd.f32 %v740_v62, %v727_v60 }
 0x172   : > { %v1407_v4 = vpop.eup %1406  ;;  %1412 = vtanh.f32 %v792_v2 }
 0x173   : > { %v754_v47 = vmul.f32 %v1407_v4, %v753_v1 }
 0x174   : > { %v814_v7 = vpop.permute.xlu1 %813 }
 0x175   : > { %v755_v8 = vadd.f32 %v754_v47, %v741_v6  ;;  %v820_v10 = vadd.f32 %v819_v3, %v814_v7 }
 0x177   : > { %v1409_v13 = vpop.eup %1408  ;;  %1414 = vtanh.f32 %v820_v10  ;;  %v769_v17 = vadd.f32 %v768_v9, %v755_v8 }
 0x178   : > { %v782_v14 = vmul.f32 %v1409_v13, %v781_v11  ;;  %v1411_v20 = vpop.eup %1410 }
 0x179   : > { %v828_v56 = vpop.permute.xlu1 %827  ;;  %v810_v16 = vmul.f32 %v1411_v20, %v809_v22 }
 0x17a   : > { %v834_v18 = vadd.f32 %v833_v12, %v828_v56  ;;  %v783_v23 = vadd.f32 %v782_v14, %v769_v17 }
 0x17c   : > { %v1413_v21 = vpop.eup %1412  ;;  %1416 = vtanh.f32 %v834_v18 }
 0x17d   : > { %v796_v61 = vmul.f32 %v1413_v21, %v795_v19 }
 0x17f   : > { %v797_v24 = vadd.f32 %v796_v61, %v783_v23 }
 0x181   : > { %v1415_v26 = vpop.eup %1414  ;;  %v811_v0 = vadd.f32 %v810_v16, %v797_v24 }
 0x182   : > { %v824_v15 = vmul.f32 %v1415_v26, %v823_v25 }
 0x184   : > { %v825_v29 = vadd.f32 %v824_v15, %v811_v0 }
 0x186   : > { %v1417_v28 = vpop.eup %1416 }
 0x187   : > { %v838_v30 = vmul.f32 %v1417_v28, %v837_v27 }
 0x189   : > { %v839_v31 = vadd.f32 %v838_v30, %v825_v29 }
 0x18b   : > { %v841_v32 = vsel %vm840_vm0, %v839_v31, -inf }
 0x18c   : > { %842 = vmax.xlane.f32.xlu0 %v841_v32 }
 0x219   : > { %v843_v35 = vpop.xlane.xlu0 %842 }
 0x21a   : > { %v844_v33 = vsub.f32 %v839_v31, %v843_v35 }
 0x21c   : > { %v845_v34 = vmul.f32 1.442695, %v844_v33 }
 0x21e   : > { %1418 = vpow2.f32 %v845_v34 }
 0x228   : > { %v1419_v36 = vpop.eup %1418 }
 0x229   : > { %v847_v38 = vsel %vm840_vm0, %v1419_v36, 0.0 }
 0x22a   : > { %848 = vadd.xlane.f32.xlu1 %v847_v38 }
 0x2b7   : > { %v849_v42 = vpop.xlane.xlu1 %848 }
 0x2b8   : > { %v850_v43 = vadd.f32 1e-05, %v849_v42 }
 0x2ba   : > { %1420 = vrcp.f32 %v850_v43 }
 0x2c4   : > { %v1421_v44 = vpop.eup %1420 }
 0x2c5   : > { %v852_v45 = vmul.f32 %v1421_v44, %v1419_v36 }
 0x2c7   : > { %1195 = vmatmul.mubr.msk.f32.vlgmr.msra.gmra.mrb[0].mxu0 %vm840_vm0, %v852_v45  ;;  %853 = vst.msk [vmem:[%s383_s21] sm:$0xff] %vm840_vm0, %v852_v45 }
 0x2c8   : > { %1538 = shalt.err (!%p1535_p13)
}
 0x2c9   : > { %s1539_s12 = scalar_lea.hbm %s2154_s10, 128  ;;  %s1543_s13 = scalar_lea.hbm %s2235_s6, 256 }
 0x2ca   : > { %p1540_p0 = scmp.ne.s32.totalorder %s2154_s10, %s1539_s12  ;;  %p1544_p9 = scmp.lt.u32.totalorder %s2154_s10, %s2235_s6 }
 0x2cb   : > { %p1545_p10 = scmp.lt.u32.totalorder %s1543_s13, %s1539_s12  ;;  %p1547_p4 = scmp.lt.u32.totalorder %s1539_s12, %s2154_s10 }
 0x2cc   : > { %p1541_p5 = pnand %p1540_p0, %p2273_p6 }
 0x2cd   : > { %p1546_p3 = por %p1545_p10, %p1544_p9 }
 0x2ce   : > { %p1542_p11 = pneg %p1541_p5 }
 0x2cf   : > { %p1548_p8 = por %p1547_p4, %p1546_p3 }
 0x2d1   : > { %p1549_p2 = pnand %p1548_p8, %p1542_p11 }
 0x2d3   : > { %1552 = shalt.err (!%p1549_p2)
}
 0x2d4   : > { %1208 = dma.vmem_to_hbm [thread:$0]  (%p2273_p6), %s965_s16, 128, %s2154_s10, %s936_s1   ;;  %vm928_vm2 = vcmask 31744  }
 0x2d5   : > { %s376_s30 = scalar_lea.vmem [#allocation11], %s1940_s9  ;;  %s2180_s14 = scalar_lea.hbm %s2234_s5, %s1185_s29 }
 0x2d6   : > { %s950_s21 = sshll.u32 %s376_s30, 4  ;;  %s931_s7 = scalar_lea.sflag [#allocation5], %s1937_s20  ;;  %s2182_s21 = int_to_ptr.vmem [resolvable:$true] %s950_s21 }
 0x2d7   : > { %s1553_s28 = scalar_lea.vmem %s2182_s21, 128  ;;  %s1690_s26 = smov [#allocation11]  }
 0x2d8   : > { %p1554_p7 = scmp.ne.s32.totalorder %s2182_s21, %s1553_s28  ;;  %s1557_s9 = sshll.u32 %s1690_s26, 4  ;;  %s1558_s9 = int_to_ptr.vmem [resolvable:$false] %s1557_s9 }
 0x2d9   : > { %s1559_s10 = scalar_lea.vmem %s1558_s9, 256  ;;  %p1560_p13 = scmp.lt.s32.totalorder %s2182_s21, %s1558_s9 }
 0x2da   : > { %p1555_p12 = pnand %p1554_p7, %p2273_p6  ;;  %p1561_p0 = scmp.lt.s32.totalorder %s1559_s10, %s1553_s28 }
 0x2dc   : > { %p1556_p1 = pneg %p1555_p12  ;;  %p1562_p5 = por %p1561_p0, %p1560_p13 }
 0x2de   : > { %p1563_p11 = pnand %p1562_p5, %p1556_p1 }
 0x39a   : > { %v924_v46 = vpop.f32.mrb[0].mxu0 }
 0x39b   : > { %929 = vst.msk [vmem:[%s376_s30] sm:$0xff] %vm928_vm2, %v924_v46  ;;  %v1196_v49 = vpop.f32.mrb[1].mxu0 }
 0x39c   : > { %1566 = shalt.err (!%p1563_p11)
}
 0x39d   : > { %s1567_s20 = scalar_lea.hbm %s2180_s14, 128  ;;  %s1571_s1 = scalar_lea.hbm %s2234_s5, 256 }
 0x39e   : > { %p1568_p9 = scmp.ne.s32.totalorder %s2180_s14, %s1567_s20  ;;  %p1572_p4 = scmp.lt.u32.totalorder %s2180_s14, %s2234_s5 }
 0x39f   : > { %p1573_p8 = scmp.lt.u32.totalorder %s1571_s1, %s1567_s20  ;;  %p1575_p7 = scmp.lt.u32.totalorder %s1567_s20, %s2180_s14 }
 0x3a0   : > { %p1569_p10 = pnand %p1568_p9, %p2273_p6 }
 0x3a1   : > { %p1574_p2 = por %p1573_p8, %p1572_p4 }
 0x3a2   : > { %p1570_p3 = pneg %p1569_p10 }
 0x3a3   : > { %p1576_p12 = por %p1575_p7, %p1574_p2 }
 0x3a5   : > { %p1577_p1 = pnand %p1576_p12, %p1570_p3 }
 0x3a7   : > { %1580 = shalt.err (!%p1577_p1)
}
 0x3a8   : > { %1207 = dma.vmem_to_hbm [thread:$0]  (%p2273_p6), %s2182_s21, 128, %s2180_s14, %s931_s7  }
 0x3a9 PF: > { %s2274_s25 = sld [smem:[#allocation20_spill]]  ;;  %s976_s11 = sand.u32 1, %s1627_s23  }
 0x3aa   : > { %p2275_p13 = scmp.ne.s32.totalorder %s2261_s17, 0  ;;  %s977_s13 = scalar_lea.sflag [#allocation5], %s976_s11 }
 0x3af   : > { %p2276_p0 = scmp.ge.s32.totalorder %s2274_s25, 2 }
 0x3b1   : > { %p1226_p5 = pnand %p2276_p0, %p2275_p13 }
 0x3b3   : > { %1618 = dma.done.wait (!%p1226_p5), %s977_s13, 128  }
 0x3b4   : > { %1620 = vsyncadd (!%p1226_p5), %s977_s13, 4294967168  ;;  %s986_s8 = scalar_lea.sflag [#allocation13], %s976_s11 }
 0x3b5   : > { %1622 = dma.done.wait (!%p1226_p5), %s986_s8, 128  }
 0x3b6   : > { %1624 = vsyncadd (!%p1226_p5), %s986_s8, 4294967168  ;;  %s31_s4 = sadd.s32 1, %s2274_s25   ;;  %s2277_s15 = sld [smem:[#allocation19_spill]] }
 0x3b7   : > { %p28_p11 = scmp.ge.s32.totalorder %s31_s4, 4   ;;  %s2278_s25 = sld [smem:[#allocation22_spill]] }
 0x3b8   : > { %s2279_s18 = sld [smem:[#allocation21_spill]]  ;;  %s2280_s23 = smov %s1631_s24 }
 0x3b9   : > { %s2282_s26 = smov %s1643_s27  ;;  %30 = sbr.rel (!%p28_p11) target bundleno = 14 (0xe), region = 131 }
 0x3bc   : > { %s2281_s24 = smov %s2277_s15 }
 0x3be   : > { %s2283_s27 = smov %s2279_s18 }
 0x3c0   :  { %991 = vsyncpa [#allocation4], 1 }
 0x3c1   :  { %993 = vsyncpa [#allocation4 + $0x1], 1 }
 0x3c2   :  { %994 = vsyncpa [#allocation8], 1 }
 0x3c3   :  { %996 = vsyncpa [#allocation8 + $0x1], 1 }
 0x3c4   :  { %997 = vsyncpa [#allocation5], 1 }
 0x3c5   :  { %999 = vsyncpa [#allocation5 + $0x1], 1 }
 0x3c6   :  { %1000 = vsyncpa [#allocation13], 1 }
 0x3c7   :  { %1002 = vsyncpa [#allocation13 + $0x1], 1 }
 0x3c8   :  { %1003 = vsyncpa [#allocation6], 1 }
 0x3c9   :  { %1005 = vsyncpa [#allocation6 + $0x1], 1 }

</bundles_post_ra>
